<compile_context>
chip_gen: v5e
topology: v5e:2x2
jax: 0.10.0
libtpu: 0.0.40
codegen_flags: <defaults>
</compile_context>

<pallas_src>
import functools

import numpy as np

import jax
import jax.numpy as jnp
from jax import lax
from jax.experimental import pallas as pl
from jax.experimental.pallas import tpu as pltpu

EPS = 1e-5          # PyTorch BatchNorm2d default eps
NEG_SLOPE = 0.05    # LeakyReLU negative_slope

# MXU operand dtype. f32 keeps the kernel within 1e-3 of the f32 reference.
# TODO(synk): on v6e/v7x at production sizes set this to jnp.bfloat16 (~3x MXU
# throughput; f32 operands are decomposed into multiple bf16 passes) and
# re-validate the tolerance.  BN/LeakyReLU math stays f32 regardless (v5e has
# no bf16 VPU/EUP path).
MXU_DTYPE = jnp.float32


def _round_up(v, m):
    return (v + m - 1) // m * m


# ---------------- fused Pallas kernel ----------------

def _fused_kernel(x_ref, w_ref, gb_ref, mask_ref, o_ref, slab_ref,
                  *, offsets, inv_cnt):
    """conv (one MXU matmul over an in-VMEM im2col slab) + BN(train) + LeakyReLU.

    x_ref    : (N, Cin, P_IN)    zero-padded, spatially-flattened NCHW input
    w_ref    : (Cout, T*Cin)     weights; rows ordered (j = ry*r + rx, c2),
                                 cols ordered (tap, cin)
    gb_ref   : (C2, 2)           BN gamma (col 0) / beta (col 1)
    mask_ref : (1, N*P_OUT)      1.0 at valid conv output lanes, else 0.0
    o_ref    : (N, Cout, P_OUT)  output, channel order (j, c2)
    slab_ref : (T*Cin, N*P_OUT)  VMEM scratch: im2col slab
    """
    n_img, cout, p_out = o_ref.shape
    c2 = gb_ref.shape[0]
    rr = cout // c2
    cin = x_ref.shape[1]

    # ---- build the im2col slab in VMEM from lane-shifted tap slices ----
    for n in range(n_img):
        for t, off in enumerate(offsets):
            slab_ref[t * cin:(t + 1) * cin, n * p_out:(n + 1) * p_out] = (
                x_ref[n, :, off:off + p_out].astype(slab_ref.dtype))

    # ---- conv: ONE (Cout, T*Cin) @ (T*Cin, N*P_OUT) MXU matmul, f32 accumulate ----
    acc = jnp.dot(w_ref[...].astype(slab_ref.dtype), slab_ref[...],
                  preferred_element_type=jnp.float32)          # (Cout, NP) f32

    # ---- BN(train) batch stats, single pass: E[x], E[x^2] over valid lanes ----
    mask = mask_ref[...]                                       # (1, NP)
    am = acc * mask
    s1 = jnp.sum(am, axis=1, keepdims=True)                    # (Cout, 1)
    s2 = jnp.sum(am * acc, axis=1, keepdims=True)              # (Cout, 1)
    # group-reduce the rr conv channels of each pixel-shuffle output channel:
    # with (j, c2) row ordering, group members are the contiguous C2-row blocks.
    gs1 = s1[0:c2, :]
    gs2 = s2[0:c2, :]
    for j in range(1, rr):
        gs1 = gs1 + s1[j * c2:(j + 1) * c2, :]
        gs2 = gs2 + s2[j * c2:(j + 1) * c2, :]
    mean = gs1 * inv_cnt                                       # (C2, 1)
    var = jnp.maximum(gs2 * inv_cnt - mean * mean, 0.0)        # biased, single pass
    inv_std = lax.rsqrt(var + EPS)
    gamma = gb_ref[:, 0:1]                                     # (C2, 1)
    beta = gb_ref[:, 1:2]                                      # (C2, 1)
    scale = inv_std * gamma                                    # (C2, 1)
    shift = beta - mean * scale                                # (C2, 1)

    # ---- normalize + affine + LeakyReLU per (j, c2) row block; lane-dense stores ----
    for j in range(rr):
        z = acc[j * c2:(j + 1) * c2, :] * scale + shift        # (C2, NP)
        y = jnp.where(z >= 0.0, z, NEG_SLOPE * z)
        for n in range(n_img):
            o_ref[n, j * c2:(j + 1) * c2, :] = (
                y[:, n * p_out:(n + 1) * p_out].astype(o_ref.dtype))


# ---------------- wrapper ----------------

@functools.partial(jax.jit, static_argnames=("stride", "pad", "upscale"))
def upscale_block_lrelu(x, w, gamma, beta, *, stride, pad, upscale):
    N, Cin, H, W = x.shape
    Cout, _, kh, kw = w.shape
    r = upscale
    rr = r * r
    C2 = Cout // rr
    Hp, Wp = H + 2 * pad, W + 2 * pad
    Ho = (Hp - kh) // stride + 1
    Wo = (Wp - kw) // stride + 1
    S = Hp * Wp
    p_out = _round_up(S, 128)                 # lane-dense flat-spatial length
    off_max = (kh - 1) * Wp + (kw - 1)
    # single pad: extra zero rows at the bottom so the flat buffer covers the
    # largest conv-tap offset (replaces the old second flat jnp.pad)
    extra = (max(0, p_out + off_max - S) + Wp - 1) // Wp
    p_in = (Hp + extra) * Wp
    xf = jnp.pad(x, ((0, 0), (0, 0), (pad, pad + extra), (pad, pad))).reshape(N, Cin, p_in)

    # weights: rows ordered (j = ry*r + rx, c2)  -> post-shuffle channel order,
    #          cols ordered (tap, cin)           -> matches the im2col slab rows
    w2 = jnp.transpose(w.reshape(C2, rr, Cin, kh, kw),
                       (1, 0, 3, 4, 2)).reshape(Cout, kh * kw * Cin)
    gb = jnp.stack([gamma, beta], axis=1).astype(jnp.float32)       # (C2, 2)

    # trace-time constant: valid conv-output lane mask (tiled over the N images)
    pidx = np.arange(p_out)
    hp_, wp_ = pidx // Wp, pidx % Wp
    valid = ((pidx < S)
             & (hp_ % stride == 0) & (hp_ // stride < Ho)
             & (wp_ % stride == 0) & (wp_ // stride < Wo))
    mask = jnp.asarray(np.tile(valid.astype(np.float32), N).reshape(1, N * p_out))
    # TODO(synk): for a zero-extra-DMA launch, generate this mask in-kernel from
    # iota div/mod once Mosaic integer div-by-constant is confirmed on all targets.

    offsets = tuple(ky * Wp + kx for ky in range(kh) for kx in range(kw))
    inv_cnt = 1.0 / float(N * Ho * Wo * rr)

    kernel = functools.partial(_fused_kernel, offsets=offsets, inv_cnt=inv_cnt)
    T = kh * kw
    NP = N * p_out
    flops = int(2 * Cout * T * Cin * NP         # single conv matmul
                + 12 * Cout * NP)               # BN stats + normalize + LeakyReLU
    bytes_accessed = int(4 * (xf.size + w2.size + gb.size + mask.size)
                         + N * Cout * p_out * x.dtype.itemsize)

    out_flat = pl.pallas_call(
        kernel,
        out_shape=jax.ShapeDtypeStruct((N, Cout, p_out), x.dtype),
        grid=(1,),
        in_specs=[
            pl.BlockSpec((N, Cin, p_in), lambda i: (0, 0, 0)),
            pl.BlockSpec((Cout, T * Cin), lambda i: (0, 0)),
            pl.BlockSpec((C2, 2), lambda i: (0, 0)),
            pl.BlockSpec((1, NP), lambda i: (0, 0)),
        ],
        out_specs=pl.BlockSpec((N, Cout, p_out), lambda i: (0, 0, 0)),
        scratch_shapes=[pltpu.VMEM((T * Cin, NP), MXU_DTYPE)],
        compiler_params=pltpu.CompilerParams(dimension_semantics=("arbitrary",)),
        cost_estimate=pl.CostEstimate(flops=flops, transcendentals=C2,
                                      bytes_accessed=bytes_accessed),
    )(xf, w2, gb, mask)
    # TODO(synk): at production activation sizes add a leading 'parallel' grid axis
    # (batch / spatial row tiles) for dual-TC v7x, a two-pass ('arbitrary') BN stat
    # accumulation across tiles, and explicit vmem_limit_bytes for the 64 MiB budget.

    # ---- epilogue: drop invalid lanes + pixel shuffle.  Kernel channel order is
    # already (ry, rx, c2), so this is one fusable slice/reshape/transpose chain. ----
    y = out_flat[:, :, :S].reshape(N, Cout, Hp, Wp)
    y = y[:, :, 0:Ho * stride:stride, 0:Wo * stride:stride]         # (N, Cout, Ho, Wo)
    y = y.reshape(N, r, r, C2, Ho, Wo)
    y = jnp.transpose(y, (0, 3, 4, 1, 5, 2)).reshape(N, C2, Ho * r, Wo * r)
    return y


# ---------------- pure-JAX reference (PyTorch semantics) ----------------

def reference(x, w, gamma, beta, *, stride, pad, upscale):
    conv = lax.conv_general_dilated(
        x, w, (stride, stride), [(pad, pad), (pad, pad)],
        dimension_numbers=("NCHW", "OIHW", "NCHW"))
    N, C, H, W = conv.shape
    r = upscale
    C2 = C // (r * r)
    ps = conv.reshape(N, C2, r, r, H, W).transpose(0, 1, 4, 2, 5, 3)
    ps = ps.reshape(N, C2, H * r, W * r)
    mean = ps.mean(axis=(0, 2, 3), keepdims=True)
    var = ((ps - mean) ** 2).mean(axis=(0, 2, 3), keepdims=True)
    z = (ps - mean) / jnp.sqrt(var + EPS)
    z = z * gamma.reshape(1, C2, 1, 1) + beta.reshape(1, C2, 1, 1)
    return jnp.where(z >= 0, z, NEG_SLOPE * z)


if __name__ == "__main__":
    # Module config: UpscaleBlockLRelu(inf=4, outf=16, ksz=3, st=1, pad=1, upscale=2)
    inf, outf, ksz, st, pad, upscale = 4, 16, 3, 1, 1, 2
    key = jax.random.PRNGKey(0)
    k_x, k_w, k_g = jax.random.split(key, 3)

    x = jax.random.normal(k_x, (2, inf, 16, 16), dtype=jnp.float32)
    # Conv2dDCGAN init: normal(0, 0.02), bias=False
    w = 0.02 * jax.random.normal(k_w, (outf, inf, ksz, ksz), dtype=jnp.float32)
    # BatchNorm2dDCGAN init: weight ~ normal(1, 0.02), bias = 0
    c2 = outf // (upscale ** 2)
    gamma = 1.0 + 0.02 * jax.random.normal(k_g, (c2,), dtype=jnp.float32)
    beta = jnp.zeros((c2,), dtype=jnp.float32)

    out = upscale_block_lrelu(x, w, gamma, beta,
                              stride=st, pad=pad, upscale=upscale)
    out = jax.block_until_ready(out)

    ref = reference(x, w, gamma, beta, stride=st, pad=pad, upscale=upscale)
    assert out.shape == ref.shape == (2, c2, 32, 32)
    err = float(jnp.max(jnp.abs(out - ref)))
    assert jnp.allclose(out, ref, rtol=1e-3, atol=1e-3), err

    print("KERNEL_OK")
</pallas_src>

<mosaic_0001>
module attributes {stable_mosaic.version = 11 : i64} {
  func.func @_fused_kernel(%arg0: i32, %arg1: memref<2x4x432xf32, #tpu.memory_space<vmem>>, %arg2: memref<16x36xf32, #tpu.memory_space<vmem>>, %arg3: memref<4x2xf32, #tpu.memory_space<vmem>>, %arg4: memref<1x768xf32, #tpu.memory_space<vmem>>, %arg5: memref<2x16x384xf32, #tpu.memory_space<vmem>>, %arg6: memref<36x768xf32, #tpu.memory_space<vmem>>) attributes {dimension_semantics = [#tpu.dimension_semantics<arbitrary>], iteration_bounds = array<i64: 1>, scalar_prefetch = 0 : i64, scratch_operands = 1 : i64, tpu.core_type = #tpu.core_type<tc>, window_params = [{pipeline_mode = #tpu.pipeline_mode<synchronous>, transform_indices = @transform_0, window_bounds = array<i64: 2, 4, 432>}, {pipeline_mode = #tpu.pipeline_mode<synchronous>, transform_indices = @transform_1, window_bounds = array<i64: 16, 36>}, {pipeline_mode = #tpu.pipeline_mode<synchronous>, transform_indices = @transform_2, window_bounds = array<i64: 4, 2>}, {pipeline_mode = #tpu.pipeline_mode<synchronous>, transform_indices = @transform_3, window_bounds = array<i64: 1, 768>}, {pipeline_mode = #tpu.pipeline_mode<synchronous>, transform_indices = @transform_4, window_bounds = array<i64: 2, 16, 384>}]} {
    %c0 = arith.constant 0 : index
    %c0_0 = arith.constant 0 : index
    %c0_1 = arith.constant 0 : index
    %0 = vector.load %arg1[%c0, %c0_0, %c0_1] : memref<2x4x432xf32, #tpu.memory_space<vmem>>, vector<1x4x384xf32>
    %1 = vector.shape_cast %0 : vector<1x4x384xf32> to vector<4x384xf32>
    %c0_2 = arith.constant 0 : index
    %c0_3 = arith.constant 0 : index
    %2 = vector.load %arg6[%c0_2, %c0_3] : memref<36x768xf32, #tpu.memory_space<vmem>>, vector<4x384xf32>
    tpu.vector_store %arg6[%c0_2, %c0_3], %1 {strides = array<i32>} : memref<36x768xf32, #tpu.memory_space<vmem>>, vector<4x384xf32>,
    %c0_4 = arith.constant 0 : index
    %c0_5 = arith.constant 0 : index
    %c1 = arith.constant 1 : index
    %3 = vector.load %arg1[%c0_4, %c0_5, %c1] : memref<2x4x432xf32, #tpu.memory_space<vmem>>, vector<1x4x384xf32>
    %4 = vector.shape_cast %3 : vector<1x4x384xf32> to vector<4x384xf32>
    %c4 = arith.constant 4 : index
    %c0_6 = arith.constant 0 : index
    %5 = vector.load %arg6[%c4, %c0_6] : memref<36x768xf32, #tpu.memory_space<vmem>>, vector<4x384xf32>
    tpu.vector_store %arg6[%c4, %c0_6], %4 {strides = array<i32>} : memref<36x768xf32, #tpu.memory_space<vmem>>, vector<4x384xf32>,
    %c0_7 = arith.constant 0 : index
    %c0_8 = arith.constant 0 : index
    %c2 = arith.constant 2 : index
    %6 = vector.load %arg1[%c0_7, %c0_8, %c2] : memref<2x4x432xf32, #tpu.memory_space<vmem>>, vector<1x4x384xf32>
    %7 = vector.shape_cast %6 : vector<1x4x384xf32> to vector<4x384xf32>
    %c8 = arith.constant 8 : index
    %c0_9 = arith.constant 0 : index
    %8 = vector.load %arg6[%c8, %c0_9] : memref<36x768xf32, #tpu.memory_space<vmem>>, vector<4x384xf32>
    tpu.vector_store %arg6[%c8, %c0_9], %7 {strides = array<i32>} : memref<36x768xf32, #tpu.memory_space<vmem>>, vector<4x384xf32>,
    %c0_10 = arith.constant 0 : index
    %c0_11 = arith.constant 0 : index
    %c18 = arith.constant 18 : index
    %9 = vector.load %arg1[%c0_10, %c0_11, %c18] : memref<2x4x432xf32, #tpu.memory_space<vmem>>, vector<1x4x384xf32>
    %10 = vector.shape_cast %9 : vector<1x4x384xf32> to vector<4x384xf32>
    %c12 = arith.constant 12 : index
    %c0_12 = arith.constant 0 : index
    %11 = vector.load %arg6[%c12, %c0_12] : memref<36x768xf32, #tpu.memory_space<vmem>>, vector<4x384xf32>
    tpu.vector_store %arg6[%c12, %c0_12], %10 {strides = array<i32>} : memref<36x768xf32, #tpu.memory_space<vmem>>, vector<4x384xf32>,
    %c0_13 = arith.constant 0 : index
    %c0_14 = arith.constant 0 : index
    %c19 = arith.constant 19 : index
    %12 = vector.load %arg1[%c0_13, %c0_14, %c19] : memref<2x4x432xf32, #tpu.memory_space<vmem>>, vector<1x4x384xf32>
    %13 = vector.shape_cast %12 : vector<1x4x384xf32> to vector<4x384xf32>
    %c16 = arith.constant 16 : index
    %c0_15 = arith.constant 0 : index
    %14 = vector.load %arg6[%c16, %c0_15] : memref<36x768xf32, #tpu.memory_space<vmem>>, vector<4x384xf32>
    tpu.vector_store %arg6[%c16, %c0_15], %13 {strides = array<i32>} : memref<36x768xf32, #tpu.memory_space<vmem>>, vector<4x384xf32>,
    %c0_16 = arith.constant 0 : index
    %c0_17 = arith.constant 0 : index
    %c20 = arith.constant 20 : index
    %15 = vector.load %arg1[%c0_16, %c0_17, %c20] : memref<2x4x432xf32, #tpu.memory_space<vmem>>, vector<1x4x384xf32>
    %16 = vector.shape_cast %15 : vector<1x4x384xf32> to vector<4x384xf32>
    %c20_18 = arith.constant 20 : index
    %c0_19 = arith.constant 0 : index
    %17 = vector.load %arg6[%c20_18, %c0_19] : memref<36x768xf32, #tpu.memory_space<vmem>>, vector<4x384xf32>
    tpu.vector_store %arg6[%c20_18, %c0_19], %16 {strides = array<i32>} : memref<36x768xf32, #tpu.memory_space<vmem>>, vector<4x384xf32>,
    %c0_20 = arith.constant 0 : index
    %c0_21 = arith.constant 0 : index
    %c36 = arith.constant 36 : index
    %18 = vector.load %arg1[%c0_20, %c0_21, %c36] : memref<2x4x432xf32, #tpu.memory_space<vmem>>, vector<1x4x384xf32>
    %19 = vector.shape_cast %18 : vector<1x4x384xf32> to vector<4x384xf32>
    %c24 = arith.constant 24 : index
    %c0_22 = arith.constant 0 : index
    %20 = vector.load %arg6[%c24, %c0_22] : memref<36x768xf32, #tpu.memory_space<vmem>>, vector<4x384xf32>
    tpu.vector_store %arg6[%c24, %c0_22], %19 {strides = array<i32>} : memref<36x768xf32, #tpu.memory_space<vmem>>, vector<4x384xf32>,
    %c0_23 = arith.constant 0 : index
    %c0_24 = arith.constant 0 : index
    %c37 = arith.constant 37 : index
    %21 = vector.load %arg1[%c0_23, %c0_24, %c37] : memref<2x4x432xf32, #tpu.memory_space<vmem>>, vector<1x4x384xf32>
    %22 = vector.shape_cast %21 : vector<1x4x384xf32> to vector<4x384xf32>
    %c28 = arith.constant 28 : index
    %c0_25 = arith.constant 0 : index
    %23 = vector.load %arg6[%c28, %c0_25] : memref<36x768xf32, #tpu.memory_space<vmem>>, vector<4x384xf32>
    tpu.vector_store %arg6[%c28, %c0_25], %22 {strides = array<i32>} : memref<36x768xf32, #tpu.memory_space<vmem>>, vector<4x384xf32>,
    %c0_26 = arith.constant 0 : index
    %c0_27 = arith.constant 0 : index
    %c38 = arith.constant 38 : index
    %24 = vector.load %arg1[%c0_26, %c0_27, %c38] : memref<2x4x432xf32, #tpu.memory_space<vmem>>, vector<1x4x384xf32>
    %25 = vector.shape_cast %24 : vector<1x4x384xf32> to vector<4x384xf32>
    %c32 = arith.constant 32 : index
    %c0_28 = arith.constant 0 : index
    %26 = vector.load %arg6[%c32, %c0_28] : memref<36x768xf32, #tpu.memory_space<vmem>>, vector<4x384xf32>
    tpu.vector_store %arg6[%c32, %c0_28], %25 {strides = array<i32>} : memref<36x768xf32, #tpu.memory_space<vmem>>, vector<4x384xf32>,
    %c1_29 = arith.constant 1 : index
    %c0_30 = arith.constant 0 : index
    %c0_31 = arith.constant 0 : index
    %27 = vector.load %arg1[%c1_29, %c0_30, %c0_31] : memref<2x4x432xf32, #tpu.memory_space<vmem>>, vector<1x4x384xf32>
    %28 = vector.shape_cast %27 : vector<1x4x384xf32> to vector<4x384xf32>
    %c0_32 = arith.constant 0 : index
    %c384 = arith.constant 384 : index
    %29 = vector.load %arg6[%c0_32, %c384] : memref<36x768xf32, #tpu.memory_space<vmem>>, vector<4x384xf32>
    tpu.vector_store %arg6[%c0_32, %c384], %28 {strides = array<i32>} : memref<36x768xf32, #tpu.memory_space<vmem>>, vector<4x384xf32>,
    %c1_33 = arith.constant 1 : index
    %c0_34 = arith.constant 0 : index
    %c1_35 = arith.constant 1 : index
    %30 = vector.load %arg1[%c1_33, %c0_34, %c1_35] : memref<2x4x432xf32, #tpu.memory_space<vmem>>, vector<1x4x384xf32>
    %31 = vector.shape_cast %30 : vector<1x4x384xf32> to vector<4x384xf32>
    %c4_36 = arith.constant 4 : index
    %c384_37 = arith.constant 384 : index
    %32 = vector.load %arg6[%c4_36, %c384_37] : memref<36x768xf32, #tpu.memory_space<vmem>>, vector<4x384xf32>
    tpu.vector_store %arg6[%c4_36, %c384_37], %31 {strides = array<i32>} : memref<36x768xf32, #tpu.memory_space<vmem>>, vector<4x384xf32>,
    %c1_38 = arith.constant 1 : index
    %c0_39 = arith.constant 0 : index
    %c2_40 = arith.constant 2 : index
    %33 = vector.load %arg1[%c1_38, %c0_39, %c2_40] : memref<2x4x432xf32, #tpu.memory_space<vmem>>, vector<1x4x384xf32>
    %34 = vector.shape_cast %33 : vector<1x4x384xf32> to vector<4x384xf32>
    %c8_41 = arith.constant 8 : index
    %c384_42 = arith.constant 384 : index
    %35 = vector.load %arg6[%c8_41, %c384_42] : memref<36x768xf32, #tpu.memory_space<vmem>>, vector<4x384xf32>
    tpu.vector_store %arg6[%c8_41, %c384_42], %34 {strides = array<i32>} : memref<36x768xf32, #tpu.memory_space<vmem>>, vector<4x384xf32>,
    %c1_43 = arith.constant 1 : index
    %c0_44 = arith.constant 0 : index
    %c18_45 = arith.constant 18 : index
    %36 = vector.load %arg1[%c1_43, %c0_44, %c18_45] : memref<2x4x432xf32, #tpu.memory_space<vmem>>, vector<1x4x384xf32>
    %37 = vector.shape_cast %36 : vector<1x4x384xf32> to vector<4x384xf32>
    %c12_46 = arith.constant 12 : index
    %c384_47 = arith.constant 384 : index
    %38 = vector.load %arg6[%c12_46, %c384_47] : memref<36x768xf32, #tpu.memory_space<vmem>>, vector<4x384xf32>
    tpu.vector_store %arg6[%c12_46, %c384_47], %37 {strides = array<i32>} : memref<36x768xf32, #tpu.memory_space<vmem>>, vector<4x384xf32>,
    %c1_48 = arith.constant 1 : index
    %c0_49 = arith.constant 0 : index
    %c19_50 = arith.constant 19 : index
    %39 = vector.load %arg1[%c1_48, %c0_49, %c19_50] : memref<2x4x432xf32, #tpu.memory_space<vmem>>, vector<1x4x384xf32>
    %40 = vector.shape_cast %39 : vector<1x4x384xf32> to vector<4x384xf32>
    %c16_51 = arith.constant 16 : index
    %c384_52 = arith.constant 384 : index
    %41 = vector.load %arg6[%c16_51, %c384_52] : memref<36x768xf32, #tpu.memory_space<vmem>>, vector<4x384xf32>
    tpu.vector_store %arg6[%c16_51, %c384_52], %40 {strides = array<i32>} : memref<36x768xf32, #tpu.memory_space<vmem>>, vector<4x384xf32>,
    %c1_53 = arith.constant 1 : index
    %c0_54 = arith.constant 0 : index
    %c20_55 = arith.constant 20 : index
    %42 = vector.load %arg1[%c1_53, %c0_54, %c20_55] : memref<2x4x432xf32, #tpu.memory_space<vmem>>, vector<1x4x384xf32>
    %43 = vector.shape_cast %42 : vector<1x4x384xf32> to vector<4x384xf32>
    %c20_56 = arith.constant 20 : index
    %c384_57 = arith.constant 384 : index
    %44 = vector.load %arg6[%c20_56, %c384_57] : memref<36x768xf32, #tpu.memory_space<vmem>>, vector<4x384xf32>
    tpu.vector_store %arg6[%c20_56, %c384_57], %43 {strides = array<i32>} : memref<36x768xf32, #tpu.memory_space<vmem>>, vector<4x384xf32>,
    %c1_58 = arith.constant 1 : index
    %c0_59 = arith.constant 0 : index
    %c36_60 = arith.constant 36 : index
    %45 = vector.load %arg1[%c1_58, %c0_59, %c36_60] : memref<2x4x432xf32, #tpu.memory_space<vmem>>, vector<1x4x384xf32>
    %46 = vector.shape_cast %45 : vector<1x4x384xf32> to vector<4x384xf32>
    %c24_61 = arith.constant 24 : index
    %c384_62 = arith.constant 384 : index
    %47 = vector.load %arg6[%c24_61, %c384_62] : memref<36x768xf32, #tpu.memory_space<vmem>>, vector<4x384xf32>
    tpu.vector_store %arg6[%c24_61, %c384_62], %46 {strides = array<i32>} : memref<36x768xf32, #tpu.memory_space<vmem>>, vector<4x384xf32>,
    %c1_63 = arith.constant 1 : index
    %c0_64 = arith.constant 0 : index
    %c37_65 = arith.constant 37 : index
    %48 = vector.load %arg1[%c1_63, %c0_64, %c37_65] : memref<2x4x432xf32, #tpu.memory_space<vmem>>, vector<1x4x384xf32>
    %49 = vector.shape_cast %48 : vector<1x4x384xf32> to vector<4x384xf32>
    %c28_66 = arith.constant 28 : index
    %c384_67 = arith.constant 384 : index
    %50 = vector.load %arg6[%c28_66, %c384_67] : memref<36x768xf32, #tpu.memory_space<vmem>>, vector<4x384xf32>
    tpu.vector_store %arg6[%c28_66, %c384_67], %49 {strides = array<i32>} : memref<36x768xf32, #tpu.memory_space<vmem>>, vector<4x384xf32>,
    %c1_68 = arith.constant 1 : index
    %c0_69 = arith.constant 0 : index
    %c38_70 = arith.constant 38 : index
    %51 = vector.load %arg1[%c1_68, %c0_69, %c38_70] : memref<2x4x432xf32, #tpu.memory_space<vmem>>, vector<1x4x384xf32>
    %52 = vector.shape_cast %51 : vector<1x4x384xf32> to vector<4x384xf32>
    %c32_71 = arith.constant 32 : index
    %c384_72 = arith.constant 384 : index
    %53 = vector.load %arg6[%c32_71, %c384_72] : memref<36x768xf32, #tpu.memory_space<vmem>>, vector<4x384xf32>
    tpu.vector_store %arg6[%c32_71, %c384_72], %52 {strides = array<i32>} : memref<36x768xf32, #tpu.memory_space<vmem>>, vector<4x384xf32>,
    %c0_73 = arith.constant 0 : index
    %c0_74 = arith.constant 0 : index
    %54 = vector.load %arg2[%c0_73, %c0_74] : memref<16x36xf32, #tpu.memory_space<vmem>>, vector<16x36xf32>
    %c0_75 = arith.constant 0 : index
    %c0_76 = arith.constant 0 : index
    %55 = vector.load %arg6[%c0_75, %c0_76] : memref<36x768xf32, #tpu.memory_space<vmem>>, vector<36x768xf32>
    %cst = arith.constant dense<0.000000e+00> : vector<16x768xf32>
    %56 = tpu.matmul %54, %55, %cst {dimension_numbers = #tpu.dot_dimension_numbers<[1], [0], [0], [1], [0, 0, 1, 1], [], []>} : vector<16x36xf32>, vector<36x768xf32>, vector<16x768xf32> -> vector<16x768xf32>
    %c0_77 = arith.constant 0 : index
    %c0_78 = arith.constant 0 : index
    %57 = vector.load %arg4[%c0_77, %c0_78] : memref<1x768xf32, #tpu.memory_space<vmem>>, vector<1x768xf32>
    %58 = vector.broadcast %57 : vector<1x768xf32> to vector<16x768xf32>
    %59 = arith.mulf %56, %58 : vector<16x768xf32>
    %cst_79 = arith.constant dense<0.000000e+00> : vector<16xf32>
    %60 = vector.multi_reduction <add>, %59, %cst_79 [1] : vector<16x768xf32> to vector<16xf32>
    %61 = vector.shape_cast %60 : vector<16xf32> to vector<16x1xf32>
    %62 = arith.mulf %59, %56 : vector<16x768xf32>
    %cst_80 = arith.constant dense<0.000000e+00> : vector<16xf32>
    %63 = vector.multi_reduction <add>, %62, %cst_80 [1] : vector<16x768xf32> to vector<16xf32>
    %64 = vector.shape_cast %63 : vector<16xf32> to vector<16x1xf32>
    %65 = vector.extract_strided_slice %61 {offsets = [0, 0], sizes = [4, 1], strides = [1, 1]} : vector<16x1xf32> to vector<4x1xf32>
    %66 = vector.extract_strided_slice %64 {offsets = [0, 0], sizes = [4, 1], strides = [1, 1]} : vector<16x1xf32> to vector<4x1xf32>
    %67 = vector.extract_strided_slice %61 {offsets = [4, 0], sizes = [4, 1], strides = [1, 1]} : vector<16x1xf32> to vector<4x1xf32>
    %68 = arith.addf %65, %67 : vector<4x1xf32>
    %69 = vector.extract_strided_slice %64 {offsets = [4, 0], sizes = [4, 1], strides = [1, 1]} : vector<16x1xf32> to vector<4x1xf32>
    %70 = arith.addf %66, %69 : vector<4x1xf32>
    %71 = vector.extract_strided_slice %61 {offsets = [8, 0], sizes = [4, 1], strides = [1, 1]} : vector<16x1xf32> to vector<4x1xf32>
    %72 = arith.addf %68, %71 : vector<4x1xf32>
    %73 = vector.extract_strided_slice %64 {offsets = [8, 0], sizes = [4, 1], strides = [1, 1]} : vector<16x1xf32> to vector<4x1xf32>
    %74 = arith.addf %70, %73 : vector<4x1xf32>
    %75 = vector.extract_strided_slice %61 {offsets = [12, 0], sizes = [4, 1], strides = [1, 1]} : vector<16x1xf32> to vector<4x1xf32>
    %76 = arith.addf %72, %75 : vector<4x1xf32>
    %77 = vector.extract_strided_slice %64 {offsets = [12, 0], sizes = [4, 1], strides = [1, 1]} : vector<16x1xf32> to vector<4x1xf32>
    %78 = arith.addf %74, %77 : vector<4x1xf32>
    %cst_81 = arith.constant 4.8828125E-4 : f32
    %79 = vector.broadcast %cst_81 : f32 to vector<4x1xf32>
    %80 = arith.mulf %76, %79 : vector<4x1xf32>
    %cst_82 = arith.constant 4.8828125E-4 : f32
    %81 = vector.broadcast %cst_82 : f32 to vector<4x1xf32>
    %82 = arith.mulf %78, %81 : vector<4x1xf32>
    %83 = arith.mulf %80, %80 : vector<4x1xf32>
    %84 = arith.subf %82, %83 : vector<4x1xf32>
    %cst_83 = arith.constant 0.000000e+00 : f32
    %85 = vector.broadcast %cst_83 : f32 to vector<4x1xf32>
    %86 = arith.maximumf %84, %85 : vector<4x1xf32>
    %cst_84 = arith.constant 9.99999974E-6 : f32
    %87 = vector.broadcast %cst_84 : f32 to vector<4x1xf32>
    %88 = arith.addf %86, %87 : vector<4x1xf32>
    %89 = math.rsqrt %88 : vector<4x1xf32>
    %c0_85 = arith.constant 0 : index
    %c0_86 = arith.constant 0 : index
    %90 = vector.load %arg3[%c0_85, %c0_86] : memref<4x2xf32, #tpu.memory_space<vmem>>, vector<4x1xf32>
    %c0_87 = arith.constant 0 : index
    %c1_88 = arith.constant 1 : index
    %91 = vector.load %arg3[%c0_87, %c1_88] : memref<4x2xf32, #tpu.memory_space<vmem>>, vector<4x1xf32>
    %92 = arith.mulf %89, %90 : vector<4x1xf32>
    %93 = arith.mulf %80, %92 : vector<4x1xf32>
    %94 = arith.subf %91, %93 : vector<4x1xf32>
    %95 = vector.extract_strided_slice %56 {offsets = [0, 0], sizes = [4, 768], strides = [1, 1]} : vector<16x768xf32> to vector<4x768xf32>
    %96 = vector.broadcast %92 : vector<4x1xf32> to vector<4x768xf32>
    %97 = arith.mulf %95, %96 : vector<4x768xf32>
    %98 = vector.broadcast %94 : vector<4x1xf32> to vector<4x768xf32>
    %99 = arith.addf %97, %98 : vector<4x768xf32>
    %cst_89 = arith.constant 0.000000e+00 : f32
    %100 = vector.broadcast %cst_89 : f32 to vector<4x768xf32>
    %101 = arith.cmpf oge, %99, %100 : vector<4x768xf32>
    %cst_90 = arith.constant 5.000000e-02 : f32
    %102 = vector.broadcast %cst_90 : f32 to vector<4x768xf32>
    %103 = arith.mulf %102, %99 : vector<4x768xf32>
    %104 = arith.select %101, %99, %103 : vector<4x768xi1>, vector<4x768xf32>
    %105 = vector.extract_strided_slice %104 {offsets = [0, 0], sizes = [4, 384], strides = [1, 1]} : vector<4x768xf32> to vector<4x384xf32>
    %c0_91 = arith.constant 0 : index
    %c0_92 = arith.constant 0 : index
    %c0_93 = arith.constant 0 : index
    %106 = vector.load %arg5[%c0_91, %c0_92, %c0_93] : memref<2x16x384xf32, #tpu.memory_space<vmem>>, vector<1x4x384xf32>
    %107 = vector.shape_cast %106 : vector<1x4x384xf32> to vector<4x384xf32>
    %108 = vector.shape_cast %105 : vector<4x384xf32> to vector<1x4x384xf32>
    tpu.vector_store %arg5[%c0_91, %c0_92, %c0_93], %108 {strides = array<i32>} : memref<2x16x384xf32, #tpu.memory_space<vmem>>, vector<1x4x384xf32>,
    %109 = vector.extract_strided_slice %104 {offsets = [0, 384], sizes = [4, 384], strides = [1, 1]} : vector<4x768xf32> to vector<4x384xf32>
    %c1_94 = arith.constant 1 : index
    %c0_95 = arith.constant 0 : index
    %c0_96 = arith.constant 0 : index
    %110 = vector.load %arg5[%c1_94, %c0_95, %c0_96] : memref<2x16x384xf32, #tpu.memory_space<vmem>>, vector<1x4x384xf32>
    %111 = vector.shape_cast %110 : vector<1x4x384xf32> to vector<4x384xf32>
    %112 = vector.shape_cast %109 : vector<4x384xf32> to vector<1x4x384xf32>
    tpu.vector_store %arg5[%c1_94, %c0_95, %c0_96], %112 {strides = array<i32>} : memref<2x16x384xf32, #tpu.memory_space<vmem>>, vector<1x4x384xf32>,
    %113 = vector.extract_strided_slice %56 {offsets = [4, 0], sizes = [4, 768], strides = [1, 1]} : vector<16x768xf32> to vector<4x768xf32>
    %114 = vector.broadcast %92 : vector<4x1xf32> to vector<4x768xf32>
    %115 = arith.mulf %113, %114 : vector<4x768xf32>
    %116 = vector.broadcast %94 : vector<4x1xf32> to vector<4x768xf32>
    %117 = arith.addf %115, %116 : vector<4x768xf32>
    %cst_97 = arith.constant 0.000000e+00 : f32
    %118 = vector.broadcast %cst_97 : f32 to vector<4x768xf32>
    %119 = arith.cmpf oge, %117, %118 : vector<4x768xf32>
    %cst_98 = arith.constant 5.000000e-02 : f32
    %120 = vector.broadcast %cst_98 : f32 to vector<4x768xf32>
    %121 = arith.mulf %120, %117 : vector<4x768xf32>
    %122 = arith.select %119, %117, %121 : vector<4x768xi1>, vector<4x768xf32>
    %123 = vector.extract_strided_slice %122 {offsets = [0, 0], sizes = [4, 384], strides = [1, 1]} : vector<4x768xf32> to vector<4x384xf32>
    %c0_99 = arith.constant 0 : index
    %c4_100 = arith.constant 4 : index
    %c0_101 = arith.constant 0 : index
    %124 = vector.load %arg5[%c0_99, %c4_100, %c0_101] : memref<2x16x384xf32, #tpu.memory_space<vmem>>, vector<1x4x384xf32>
    %125 = vector.shape_cast %124 : vector<1x4x384xf32> to vector<4x384xf32>
    %126 = vector.shape_cast %123 : vector<4x384xf32> to vector<1x4x384xf32>
    tpu.vector_store %arg5[%c0_99, %c4_100, %c0_101], %126 {strides = array<i32>} : memref<2x16x384xf32, #tpu.memory_space<vmem>>, vector<1x4x384xf32>,
    %127 = vector.extract_strided_slice %122 {offsets = [0, 384], sizes = [4, 384], strides = [1, 1]} : vector<4x768xf32> to vector<4x384xf32>
    %c1_102 = arith.constant 1 : index
    %c4_103 = arith.constant 4 : index
    %c0_104 = arith.constant 0 : index
    %128 = vector.load %arg5[%c1_102, %c4_103, %c0_104] : memref<2x16x384xf32, #tpu.memory_space<vmem>>, vector<1x4x384xf32>
    %129 = vector.shape_cast %128 : vector<1x4x384xf32> to vector<4x384xf32>
    %130 = vector.shape_cast %127 : vector<4x384xf32> to vector<1x4x384xf32>
    tpu.vector_store %arg5[%c1_102, %c4_103, %c0_104], %130 {strides = array<i32>} : memref<2x16x384xf32, #tpu.memory_space<vmem>>, vector<1x4x384xf32>,
    %131 = vector.extract_strided_slice %56 {offsets = [8, 0], sizes = [4, 768], strides = [1, 1]} : vector<16x768xf32> to vector<4x768xf32>
    %132 = vector.broadcast %92 : vector<4x1xf32> to vector<4x768xf32>
    %133 = arith.mulf %131, %132 : vector<4x768xf32>
    %134 = vector.broadcast %94 : vector<4x1xf32> to vector<4x768xf32>
    %135 = arith.addf %133, %134 : vector<4x768xf32>
    %cst_105 = arith.constant 0.000000e+00 : f32
    %136 = vector.broadcast %cst_105 : f32 to vector<4x768xf32>
    %137 = arith.cmpf oge, %135, %136 : vector<4x768xf32>
    %cst_106 = arith.constant 5.000000e-02 : f32
    %138 = vector.broadcast %cst_106 : f32 to vector<4x768xf32>
    %139 = arith.mulf %138, %135 : vector<4x768xf32>
    %140 = arith.select %137, %135, %139 : vector<4x768xi1>, vector<4x768xf32>
    %141 = vector.extract_strided_slice %140 {offsets = [0, 0], sizes = [4, 384], strides = [1, 1]} : vector<4x768xf32> to vector<4x384xf32>
    %c0_107 = arith.constant 0 : index
    %c8_108 = arith.constant 8 : index
    %c0_109 = arith.constant 0 : index
    %142 = vector.load %arg5[%c0_107, %c8_108, %c0_109] : memref<2x16x384xf32, #tpu.memory_space<vmem>>, vector<1x4x384xf32>
    %143 = vector.shape_cast %142 : vector<1x4x384xf32> to vector<4x384xf32>
    %144 = vector.shape_cast %141 : vector<4x384xf32> to vector<1x4x384xf32>
    tpu.vector_store %arg5[%c0_107, %c8_108, %c0_109], %144 {strides = array<i32>} : memref<2x16x384xf32, #tpu.memory_space<vmem>>, vector<1x4x384xf32>,
    %145 = vector.extract_strided_slice %140 {offsets = [0, 384], sizes = [4, 384], strides = [1, 1]} : vector<4x768xf32> to vector<4x384xf32>
    %c1_110 = arith.constant 1 : index
    %c8_111 = arith.constant 8 : index
    %c0_112 = arith.constant 0 : index
    %146 = vector.load %arg5[%c1_110, %c8_111, %c0_112] : memref<2x16x384xf32, #tpu.memory_space<vmem>>, vector<1x4x384xf32>
    %147 = vector.shape_cast %146 : vector<1x4x384xf32> to vector<4x384xf32>
    %148 = vector.shape_cast %145 : vector<4x384xf32> to vector<1x4x384xf32>
    tpu.vector_store %arg5[%c1_110, %c8_111, %c0_112], %148 {strides = array<i32>} : memref<2x16x384xf32, #tpu.memory_space<vmem>>, vector<1x4x384xf32>,
    %149 = vector.extract_strided_slice %56 {offsets = [12, 0], sizes = [4, 768], strides = [1, 1]} : vector<16x768xf32> to vector<4x768xf32>
    %150 = vector.broadcast %92 : vector<4x1xf32> to vector<4x768xf32>
    %151 = arith.mulf %149, %150 : vector<4x768xf32>
    %152 = vector.broadcast %94 : vector<4x1xf32> to vector<4x768xf32>
    %153 = arith.addf %151, %152 : vector<4x768xf32>
    %cst_113 = arith.constant 0.000000e+00 : f32
    %154 = vector.broadcast %cst_113 : f32 to vector<4x768xf32>
    %155 = arith.cmpf oge, %153, %154 : vector<4x768xf32>
    %cst_114 = arith.constant 5.000000e-02 : f32
    %156 = vector.broadcast %cst_114 : f32 to vector<4x768xf32>
    %157 = arith.mulf %156, %153 : vector<4x768xf32>
    %158 = arith.select %155, %153, %157 : vector<4x768xi1>, vector<4x768xf32>
    %159 = vector.extract_strided_slice %158 {offsets = [0, 0], sizes = [4, 384], strides = [1, 1]} : vector<4x768xf32> to vector<4x384xf32>
    %c0_115 = arith.constant 0 : index
    %c12_116 = arith.constant 12 : index
    %c0_117 = arith.constant 0 : index
    %160 = vector.load %arg5[%c0_115, %c12_116, %c0_117] : memref<2x16x384xf32, #tpu.memory_space<vmem>>, vector<1x4x384xf32>
    %161 = vector.shape_cast %160 : vector<1x4x384xf32> to vector<4x384xf32>
    %162 = vector.shape_cast %159 : vector<4x384xf32> to vector<1x4x384xf32>
    tpu.vector_store %arg5[%c0_115, %c12_116, %c0_117], %162 {strides = array<i32>} : memref<2x16x384xf32, #tpu.memory_space<vmem>>, vector<1x4x384xf32>,
    %163 = vector.extract_strided_slice %158 {offsets = [0, 384], sizes = [4, 384], strides = [1, 1]} : vector<4x768xf32> to vector<4x384xf32>
    %c1_118 = arith.constant 1 : index
    %c12_119 = arith.constant 12 : index
    %c0_120 = arith.constant 0 : index
    %164 = vector.load %arg5[%c1_118, %c12_119, %c0_120] : memref<2x16x384xf32, #tpu.memory_space<vmem>>, vector<1x4x384xf32>
    %165 = vector.shape_cast %164 : vector<1x4x384xf32> to vector<4x384xf32>
    %166 = vector.shape_cast %163 : vector<4x384xf32> to vector<1x4x384xf32>
    tpu.vector_store %arg5[%c1_118, %c12_119, %c0_120], %166 {strides = array<i32>} : memref<2x16x384xf32, #tpu.memory_space<vmem>>, vector<1x4x384xf32>,
    return
  }
  func.func @transform_0(%arg0: i32) -> (i32, i32, i32) {
    %c0_i32 = arith.constant 0 : i32
    %c0_i32_0 = arith.constant 0 : i32
    %c0_i32_1 = arith.constant 0 : i32
    %c0_i32_2 = arith.constant 0 : i32
    return %c0_i32, %c0_i32_0, %c0_i32_1 : i32, i32, i32
  }
  func.func @transform_1(%arg0: i32) -> (i32, i32) {
    %c0_i32 = arith.constant 0 : i32
    %c0_i32_0 = arith.constant 0 : i32
    %c0_i32_1 = arith.constant 0 : i32
    return %c0_i32, %c0_i32_0 : i32, i32
  }
  func.func @transform_2(%arg0: i32) -> (i32, i32) {
    %c0_i32 = arith.constant 0 : i32
    %c0_i32_0 = arith.constant 0 : i32
    %c0_i32_1 = arith.constant 0 : i32
    return %c0_i32, %c0_i32_0 : i32, i32
  }
  func.func @transform_3(%arg0: i32) -> (i32, i32) {
    %c0_i32 = arith.constant 0 : i32
    %c0_i32_0 = arith.constant 0 : i32
    %c0_i32_1 = arith.constant 0 : i32
    return %c0_i32, %c0_i32_0 : i32, i32
  }
  func.func @transform_4(%arg0: i32) -> (i32, i32, i32) {
    %c0_i32 = arith.constant 0 : i32
    %c0_i32_0 = arith.constant 0 : i32
    %c0_i32_1 = arith.constant 0 : i32
    %c0_i32_2 = arith.constant 0 : i32
    return %c0_i32, %c0_i32_0, %c0_i32_1 : i32, i32, i32
  }
}

</mosaic_0001>

<bundles_post_ra>
// kernel: upscale_block_lrelu.1
= control target key start
LH: loop header
LB: loop body
LE: loop exit
PB: predicated region body
PF: predicated region fallthrough
CT: control target
= control target key end

     0   :  { %s1054_s21 = smov 127   ;;  %s1055_s22 = smov 126   ;;  %vm53_vm0 = vcmask 1039360   ;;  %vm82_vm1 = vcmask 1031168   ;;  %vm112_vm2 = vcmask 900096   ;;  %vm141_vm3 = vcmask 891904   ;;  %s1577_s0 = inlined_call_operand.vmem [shape: f32[2,4,432], index: 0, kind: input, shape index: {}]   ;;  %s1578_s1 = inlined_call_operand.vmem [shape: f32[16,36], index: 1, kind: input, shape index: {}]   ;;  %s1579_s3 = inlined_call_operand.vmem [shape: f32[1,768], index: 3, kind: input, shape index: {}]   ;;  %s1580_s2 = inlined_call_operand.vmem [shape: f32[4,2], index: 2, kind: input, shape index: {}]   ;;  %s1581_s4 = inlined_call_operand.vmem [shape: f32[2,16,384], index: 4, kind: output, shape index: {}]  }
   0x1   :  { %v18_v0 = vld [vmem:[%s1577_s0 + $0x8] sm:$0xf]  ;;  %v1096_v1 = vld [vmem:[%s1577_s0] sm:$0xff]  ;;  %s1056_s23 = smov 110   ;;  %s1057_s24 = smov 109   ;;  %v1154_v35 = vld [vmem:[%s1577_s0 + $0x10] sm:$0xff] }
   0x2   :  { %23 = vst [vmem:[#allocation1 + $0x10] ss:$2 sm:$0xff] %v18_v0  ;;  %v1102_v2 = vld [vmem:[%s1577_s0 + $0x8] sm:$0xff]  ;;  %s1058_s25 = smov 108   ;;  %s1059_s26 = smov 92   ;;  %v1163_v40 = vld [vmem:[%s1577_s0 + $0x18] sm:$0xff] }
   0x3   :  { %21 = vst [vmem:[#allocation1] ss:$2 sm:$0xff] %v1096_v1  ;;  %v982_v34 = vld [vmem:[%s1577_s0 + $0x18] sm:$0xf]  ;;  %s1060_s5 = smov 90   ;;  %s1061_s6 = smov 91  }
   0x4   :  { %vm171_vm4 = vcmask 883712   ;;  %vm200_vm5 = vcmask 752640   ;;  %vm230_vm6 = vcmask 744448   ;;  %vm259_vm7 = vcmask 736256   ;;  %s1063_s14 = smov 1  }
   0x5   :  { %vm553_vm8 = vcmask 1043456   ;;  %vm546_vm9 = vcmask 293888  }
   0x9   :  { %v26_v3 = vld.sshfl [vmem:[#allocation1 + $0x10] sm:$0xff pattern:$0x75316420] }
   0xa   :  { %40 = vst [vmem:[#allocation1 + $0x11] ss:$2 sm:$0xff] %v1102_v2  ;;  %v24_v4 = vld.sshfl [vmem:[#allocation1] sm:$0xff pattern:$0x75316420] }
   0xb   :  { %32 = vst [vmem:[#allocation2 + $0xd8] sm:$0xf] %v26_v3  ;;  %v25_v5 = vld.sshfl [vmem:[#allocation1 + $0x8] sm:$0xff pattern:$0x75316420] }
   0xc   :  { %38 = vst [vmem:[#allocation1 + $0x1] ss:$2 sm:$0xff] %v1096_v1 }
   0xd   :  { %30 = vst [vmem:[#allocation2 + $0x80] sm:$0xf] %v24_v4 }
   0xe   :  { %31 = vst [vmem:[#allocation2] sm:$0xf] %v25_v5 }
  0x11   :  { %v43_v6 = vld.sshfl [vmem:[#allocation1 + $0x10] sm:$0xff pattern:$0x75316420]  ;;  %v44_v7 = vld.sshfl [vmem:[#allocation1 + $0x18] sm:$0xff pattern:$0x75316420] }
  0x12   :  { %49 = vrot.lane.b32.xlu1 %v43_v6, %s1054_s21  ;;  %51 = vrot.lane.b32.xlu2 %v44_v7, %s1054_s21  ;;  %69 = vst [vmem:[#allocation1 + $0x10] ss:$2 sm:$0xff] %v1102_v2 }
  0x13   :  { %v1109_v8 = vld.sshfl [vmem:[#allocation1] sm:$0xff pattern:$0x75316420]  ;;  %v1111_v9 = vld.sshfl [vmem:[#allocation1 + $0x8] sm:$0xff pattern:$0x75316420] }
  0x14   :  { %67 = vst [vmem:[#allocation1] ss:$2 sm:$0xff] %v1096_v1 }
  0x19   :  { %v72_v10 = vld.sshfl [vmem:[#allocation1 + $0x10] sm:$0xff pattern:$0x75316420]  ;;  %v73_v11 = vld.sshfl [vmem:[#allocation1 + $0x18] sm:$0xff pattern:$0x75316420] }
  0x1a   :  { %78 = vrot.lane.b32.xlu1 %v72_v10, %s1055_s22  ;;  %80 = vrot.lane.b32.xlu2 %v73_v11, %s1055_s22  ;;  %99 = vst [vmem:[#allocation1 + $0x11] ss:$2 sm:$0xff] %v1102_v2 }
  0x1b   :  { %v70_v12 = vld.sshfl [vmem:[#allocation1] sm:$0xff pattern:$0x75316420]  ;;  %v1117_v13 = vld.sshfl [vmem:[#allocation1 + $0x8] sm:$0xff pattern:$0x75316420] }
  0x1c   :  { %74 = vrot.lane.b32.xlu0 %v70_v12, %s1055_s22  ;;  %97 = vst [vmem:[#allocation1 + $0x1] ss:$2 sm:$0xff] %v1096_v1 }
  0x21   :  { %v103_v14 = vld.sshfl [vmem:[#allocation1 + $0x18] sm:$0xff pattern:$0x75316420]  ;;  %v102_v15 = vld.sshfl [vmem:[#allocation1 + $0x10] sm:$0xff pattern:$0x75316420] }
  0x22   :  { %110 = vrot.lane.b32.xlu1 %v103_v14, %s1056_s23  ;;  %128 = vst [vmem:[#allocation1 + $0x10] ss:$2 sm:$0xff] %v1102_v2 }
  0x23   :  { %v1123_v16 = vld.sshfl [vmem:[#allocation1] sm:$0xff pattern:$0x75316420]  ;;  %v1125_v17 = vld.sshfl [vmem:[#allocation1 + $0x8] sm:$0xff pattern:$0x75316420] }
  0x24   :  { %108 = vrot.lane.b32.xlu0 %v102_v15, %s1056_s23  ;;  %126 = vst [vmem:[#allocation1] ss:$2 sm:$0xff] %v1096_v1 }
  0x29   :  { %v132_v18 = vld.sshfl [vmem:[#allocation1 + $0x18] sm:$0xff pattern:$0x75316420]  ;;  %v131_v19 = vld.sshfl [vmem:[#allocation1 + $0x10] sm:$0xff pattern:$0x75316420] }
  0x2a   :  { %139 = vrot.lane.b32.xlu2 %v132_v18, %s1057_s24  ;;  %137 = vrot.lane.b32.xlu1 %v131_v19, %s1057_s24  ;;  %158 = vst [vmem:[#allocation1 + $0x11] ss:$2 sm:$0xff] %v1102_v2 }
  0x2b   :  { %v130_v20 = vld.sshfl [vmem:[#allocation1 + $0x8] sm:$0xff pattern:$0x75316420]  ;;  %v129_v21 = vld.sshfl [vmem:[#allocation1] sm:$0xff pattern:$0x75316420] }
  0x2c   :  { %135 = vrot.lane.b32.xlu0 %v130_v20, %s1057_s24  ;;  %156 = vst [vmem:[#allocation1 + $0x1] ss:$2 sm:$0xff] %v1096_v1 }
  0x31   :  { %v162_v22 = vld.sshfl [vmem:[#allocation1 + $0x18] sm:$0xff pattern:$0x75316420]  ;;  %v161_v23 = vld.sshfl [vmem:[#allocation1 + $0x10] sm:$0xff pattern:$0x75316420] }
  0x32   :  { %169 = vrot.lane.b32.xlu1 %v162_v22, %s1058_s25  ;;  %133 = vrot.lane.b32.xlu2 %v129_v21, %s1057_s24  ;;  %187 = vst [vmem:[#allocation1 + $0x10] ss:$2 sm:$0xff] %v1102_v2 }
  0x33   :  { %v160_v24 = vld.sshfl [vmem:[#allocation1 + $0x8] sm:$0xff pattern:$0x75316420]  ;;  %v159_v25 = vld.sshfl [vmem:[#allocation1] sm:$0xff pattern:$0x75316420] }
  0x34   :  { %167 = vrot.lane.b32.xlu0 %v161_v23, %s1058_s25  ;;  %185 = vst [vmem:[#allocation1] ss:$2 sm:$0xff] %v1096_v1 }
  0x39   :  { %v190_v26 = vld.sshfl [vmem:[#allocation1 + $0x10] sm:$0xff pattern:$0x75316420]  ;;  %v191_v27 = vld.sshfl [vmem:[#allocation1 + $0x18] sm:$0xff pattern:$0x75316420] }
  0x3a   :  { %165 = vrot.lane.b32.xlu2 %v160_v24, %s1058_s25  ;;  %163 = vrot.lane.b32.xlu1 %v159_v25, %s1058_s25  ;;  %217 = vst [vmem:[#allocation1 + $0x11] ss:$2 sm:$0xff] %v1102_v2 }
  0x3b   :  { %v189_v28 = vld.sshfl [vmem:[#allocation1 + $0x8] sm:$0xff pattern:$0x75316420]  ;;  %v188_v29 = vld.sshfl [vmem:[#allocation1] sm:$0xff pattern:$0x75316420] }
  0x3c   :  { %194 = vrot.lane.b32.xlu0 %v189_v28, %s1059_s26  ;;  %215 = vst [vmem:[#allocation1 + $0x1] ss:$2 sm:$0xff] %v1096_v1 }
  0x41   :  { %v220_v30 = vld.sshfl [vmem:[#allocation1 + $0x10] sm:$0xff pattern:$0x75316420]  ;;  %v221_v31 = vld.sshfl [vmem:[#allocation1 + $0x18] sm:$0xff pattern:$0x75316420] }
  0x42   :  { %196 = vrot.lane.b32.xlu1 %v190_v26, %s1059_s26  ;;  %192 = vrot.lane.b32.xlu2 %v188_v29, %s1059_s26  ;;  %246 = vst [vmem:[#allocation1 + $0x10] ss:$2 sm:$0xff] %v1102_v2 }
  0x43   :  { %v218_v32 = vld.sshfl [vmem:[#allocation1] sm:$0xff pattern:$0x75316420]  ;;  %v219_v33 = vld.sshfl [vmem:[#allocation1 + $0x8] sm:$0xff pattern:$0x75316420] }
  0x44   :  { %244 = vst [vmem:[#allocation1] ss:$2 sm:$0xff] %v1096_v1 }
  0x49   :  { %v249_v36 = vld.sshfl [vmem:[#allocation1 + $0x10] sm:$0xff pattern:$0x75316420]  ;;  %v250_v37 = vld.sshfl [vmem:[#allocation1 + $0x18] sm:$0xff pattern:$0x75316420] }
  0x4a   :  { %198 = vrot.lane.b32.xlu1 %v191_v27, %s1059_s26  ;;  %255 = vrot.lane.b32.xlu0 %v249_v36, %s1060_s5  ;;  %276 = vst [vmem:[#allocation1 + $0x10] ss:$2 sm:$0xff] %v982_v34 }
  0x4b   :  { %226 = vrot.lane.b32.xlu2 %v220_v30, %s1061_s6  ;;  %v248_v38 = vld.sshfl [vmem:[#allocation1 + $0x8] sm:$0xff pattern:$0x75316420]  ;;  %v247_v39 = vld.sshfl [vmem:[#allocation1] sm:$0xff pattern:$0x75316420] }
  0x4c   :  { %274 = vst [vmem:[#allocation1] ss:$2 sm:$0xff] %v1154_v35 }
  0x51   :  { %v279_v41 = vld.sshfl [vmem:[#allocation1 + $0x10] sm:$0xff pattern:$0x75316420] }
  0x52   :  { %293 = vst [vmem:[#allocation1 + $0x11] ss:$2 sm:$0xff] %v1163_v40  ;;  %257 = vrot.lane.b32.xlu0 %v250_v37, %s1060_s5  ;;  %222 = vrot.lane.b32.xlu1 %v218_v32, %s1061_s6 }
  0x53   :  { %285 = vst [vmem:[#allocation2 + $0x18] sm:$0xf] %v279_v41  ;;  %228 = vrot.lane.b32.xlu2 %v221_v31, %s1061_s6  ;;  %v277_v42 = vld.sshfl [vmem:[#allocation1] sm:$0xff pattern:$0x75316420] }
  0x54   :  { %v278_v43 = vld.sshfl [vmem:[#allocation1 + $0x8] sm:$0xff pattern:$0x75316420]  ;;  %283 = vst [vmem:[#allocation2 + $0x70] sm:$0xf] %v277_v42 }
  0x55   :  { %291 = vst [vmem:[#allocation1 + $0x1] ss:$2 sm:$0xff] %v1154_v35 }
  0x56   :  { %284 = vst [vmem:[#allocation2 + $0x8] sm:$0xf] %v278_v43 }
  0x59   :  { %v1170_v44 = vld.sshfl [vmem:[#allocation1 + $0x10] sm:$0xff pattern:$0x75316420]  ;;  %v1172_v45 = vld.sshfl [vmem:[#allocation1 + $0x18] sm:$0xff pattern:$0x75316420] }
  0x5a   :  { %321 = vst [vmem:[#allocation1 + $0x10] ss:$2 sm:$0xff] %v1163_v40  ;;  %253 = vrot.lane.b32.xlu1 %v248_v38, %s1060_s5  ;;  %251 = vrot.lane.b32.xlu0 %v247_v39, %s1060_s5 }
  0x5b   :  { %224 = vrot.lane.b32.xlu2 %v219_v33, %s1061_s6 }
  0x5c   :  { %v294_v46 = vld.sshfl [vmem:[#allocation1] sm:$0xff pattern:$0x75316420]  ;;  %v295_v47 = vld.sshfl [vmem:[#allocation1 + $0x8] sm:$0xff pattern:$0x75316420] }
  0x5d   :  { %319 = vst [vmem:[#allocation1] ss:$2 sm:$0xff] %v1154_v35 }
  0x61   :  { %v1179_v48 = vld.sshfl [vmem:[#allocation1 + $0x10] sm:$0xff pattern:$0x75316420]  ;;  %v1181_v49 = vld.sshfl [vmem:[#allocation1 + $0x18] sm:$0xff pattern:$0x75316420] }
  0x62   :  { %350 = vst [vmem:[#allocation1 + $0x11] ss:$2 sm:$0xff] %v1163_v40  ;;  %76 = vrot.lane.b32.xlu1 %v1117_v13, %s1055_s22  ;;  %106 = vrot.lane.b32.xlu0 %v1125_v17, %s1056_s23 }
  0x63   :  { %104 = vrot.lane.b32.xlu2 %v1123_v16, %s1056_s23 }
  0x64   :  { %v322_v50 = vld.sshfl [vmem:[#allocation1] sm:$0xff pattern:$0x75316420]  ;;  %v323_v51 = vld.sshfl [vmem:[#allocation1 + $0x8] sm:$0xff pattern:$0x75316420] }
  0x65   :  { %348 = vst [vmem:[#allocation1 + $0x1] ss:$2 sm:$0xff] %v1154_v35 }
  0x69   :  { %v1191_v52 = vld.sshfl [vmem:[#allocation1 + $0x10] sm:$0xff pattern:$0x75316420]  ;;  %v1193_v53 = vld.sshfl [vmem:[#allocation1 + $0x18] sm:$0xff pattern:$0x75316420] }
  0x6a   :  { %47 = vrot.lane.b32.xlu0 %v1111_v9, %s1054_s21  ;;  %298 = vrot.lane.b32.xlu1 %v294_v46, %s1054_s21  ;;  %378 = vst [vmem:[#allocation1 + $0x10] ss:$2 sm:$0xff] %v1163_v40 }
  0x6b   :  { %45 = vrot.lane.b32.xlu2 %v1109_v8, %s1054_s21 }
  0x6c   :  { %v351_v54 = vld.sshfl [vmem:[#allocation1] sm:$0xff pattern:$0x75316420]  ;;  %v352_v55 = vld.sshfl [vmem:[#allocation1 + $0x8] sm:$0xff pattern:$0x75316420]  ;;  %v52_v56 = vpop.permute.xlu2 %51 }
  0x6d   :  { %376 = vst [vmem:[#allocation1] ss:$2 sm:$0xff] %v1154_v35 }
  0x71   :  { %v381_v57 = vld.sshfl [vmem:[#allocation1 + $0x10] sm:$0xff pattern:$0x75316420]  ;;  %v1202_v58 = vld.sshfl [vmem:[#allocation1 + $0x18] sm:$0xff pattern:$0x75316420] }
  0x72   :  { %326 = vrot.lane.b32.xlu1 %v322_v50, %s1055_s22  ;;  %355 = vrot.lane.b32.xlu0 %v351_v54, %s1056_s23  ;;  %407 = vst [vmem:[#allocation1 + $0x11] ss:$2 sm:$0xff] %v1163_v40 }
  0x73   :  { %300 = vrot.lane.b32.xlu2 %v295_v47, %s1054_s21 }
  0x74   :  { %v379_v59 = vld.sshfl [vmem:[#allocation1] sm:$0xff pattern:$0x75316420]  ;;  %v380_v60 = vld.sshfl [vmem:[#allocation1 + $0x8] sm:$0xff pattern:$0x75316420]  ;;  %v81_v63 = vpop.permute.xlu2 %80 }
  0x75   :  { %405 = vst [vmem:[#allocation1 + $0x1] ss:$2 sm:$0xff] %v1154_v35 }
  0x79   :  { %v410_v61 = vld.sshfl [vmem:[#allocation1 + $0x10] sm:$0xff pattern:$0x75316420]  ;;  %v1209_v62 = vld.sshfl [vmem:[#allocation1 + $0x18] sm:$0xff pattern:$0x75316420] }
  0x7a   :  { %357 = vrot.lane.b32.xlu1 %v352_v55, %s1056_s23  ;;  %383 = vrot.lane.b32.xlu0 %v379_v59, %s1057_s24  ;;  %435 = vst [vmem:[#allocation1 + $0x10] ss:$2 sm:$0xff] %v1163_v40 }
  0x7b   :  { %328 = vrot.lane.b32.xlu2 %v323_v51, %s1055_s22 }
  0x7c   :  { %v409_v0 = vld.sshfl [vmem:[#allocation1 + $0x8] sm:$0xff pattern:$0x75316420]  ;;  %v408_v1 = vld.sshfl [vmem:[#allocation1] sm:$0xff pattern:$0x75316420] }
  0x7d   :  { %433 = vst [vmem:[#allocation1] ss:$2 sm:$0xff] %v1154_v35 }
  0x81   :  { %v438_v2 = vld.sshfl [vmem:[#allocation1 + $0x10] sm:$0xff pattern:$0x75316420]  ;;  %v439_v3 = vld.sshfl [vmem:[#allocation1 + $0x18] sm:$0xff pattern:$0x75316420] }
  0x82   :  { %385 = vrot.lane.b32.xlu1 %v380_v60, %s1057_s24  ;;  %414 = vrot.lane.b32.xlu0 %v409_v0, %s1058_s25  ;;  %464 = vst [vmem:[#allocation1 + $0x11] ss:$2 sm:$0xff] %v1163_v40 }
  0x83   :  { %412 = vrot.lane.b32.xlu2 %v408_v1, %s1058_s25 }
  0x84   :  { %v1220_v4 = vpop.permute.xlu1 %49  ;;  %v140_v5 = vpop.permute.xlu2 %139  ;;  %v437_v6 = vld.sshfl [vmem:[#allocation1 + $0x8] sm:$0xff pattern:$0x75316420]  ;;  %v436_v7 = vld.sshfl [vmem:[#allocation1] sm:$0xff pattern:$0x75316420] }
  0x85   :  { %v56_v8 = vsel %vm53_vm0, %v1220_v4, %v52_v56  ;;  %462 = vst [vmem:[#allocation1 + $0x1] ss:$2 sm:$0xff] %v1154_v35 }
  0x86   :  { %62 = vst [vmem:[#allocation2 + $0xd8] sm:$0xf0] %v56_v8 }
  0x89   :  { %v467_v9 = vld.sshfl [vmem:[#allocation1 + $0x10] sm:$0xff pattern:$0x75316420]  ;;  %v468_v10 = vld.sshfl [vmem:[#allocation1 + $0x18] sm:$0xff pattern:$0x75316420] }
  0x8a   :  { %442 = vrot.lane.b32.xlu1 %v437_v6, %s1059_s26  ;;  %440 = vrot.lane.b32.xlu0 %v436_v7, %s1059_s26  ;;  %492 = vst [vmem:[#allocation1 + $0x10] ss:$2 sm:$0xff] %v1163_v40 }
  0x8b   :  { %416 = vrot.lane.b32.xlu2 %v410_v61, %s1058_s25 }
  0x8c   :  { %v1229_v11 = vpop.permute.xlu1 %78  ;;  %v134_v12 = vpop.permute.xlu2 %133  ;;  %v465_v13 = vld.sshfl [vmem:[#allocation1] sm:$0xff pattern:$0x75316420]  ;;  %v466_v14 = vld.sshfl [vmem:[#allocation1 + $0x8] sm:$0xff pattern:$0x75316420] }
  0x8d   :  { %v85_v15 = vsel %vm82_vm1, %v1229_v11, %v81_v63  ;;  %490 = vst [vmem:[#allocation1] ss:$2 sm:$0xff] %v1154_v35  ;;  %v518_v8 = vld [vmem:[#allocation2 + $0xd8] sm:$0xff] }
  0x8e   :  { %91 = vst [vmem:[#allocation2 + $0xc8] sm:$0xf] %v85_v15  ;;  %v1234_v16 = vpop.permute.xlu0 %74 }
  0x91   :  { %v495_v34 = vld.sshfl [vmem:[#allocation1 + $0x10] sm:$0xff pattern:$0x75316420]  ;;  %v496_v40 = vld.sshfl [vmem:[#allocation1 + $0x18] sm:$0xff pattern:$0x75316420] }
  0x92   :  { %444 = vrot.lane.b32.xlu1 %v438_v2, %s1059_s26  ;;  %446 = vrot.lane.b32.xlu0 %v439_v3, %s1059_s26 }
  0x93   :  { %469 = vrot.lane.b32.xlu2 %v465_v13, %s1061_s6 }
  0x94   :  { %v111_v17 = vpop.permute.xlu1 %110  ;;  %v166_v18 = vpop.permute.xlu2 %165  ;;  %v494_v27 = vld.sshfl [vmem:[#allocation1 + $0x8] sm:$0xff pattern:$0x75316420]  ;;  %v493_v28 = vld.sshfl [vmem:[#allocation1] sm:$0xff pattern:$0x75316420] }
  0x96   :  { %v1239_v19 = vpop.permute.xlu0 %108 }
  0x97   :  { %v115_v20 = vsel %vm112_vm2, %v1239_v19, %v111_v17 }
  0x98   :  { %121 = vst [vmem:[#allocation2 + $0xc8] sm:$0xf0] %v115_v20 }
  0x9a   :  { %387 = vrot.lane.b32.xlu1 %v381_v57, %s1057_s24  ;;  %471 = vrot.lane.b32.xlu0 %v466_v14, %s1061_s6 }
  0x9b   :  { %473 = vrot.lane.b32.xlu2 %v467_v9, %s1061_s6 }
  0x9c   :  { %v138_v21 = vpop.permute.xlu1 %137  ;;  %v193_v22 = vpop.permute.xlu2 %192 }
  0x9d   :  { %v144_v23 = vsel %vm141_vm3, %v138_v21, %v140_v5 }
  0x9e   :  { %150 = vst [vmem:[#allocation2 + $0x20] sm:$0xf] %v144_v23  ;;  %v136_v24 = vpop.permute.xlu0 %135 }
  0x9f   :  { %v142_v25 = vsel %vm141_vm3, %v134_v12, %v136_v24  ;;  %v143_v26 = vsel %vm141_vm3, %v136_v24, %v138_v21  ;;  %v524_v0 = vld [vmem:[#allocation2 + $0xc8] sm:$0xff] }
  0xa0   :  { %148 = vst [vmem:[#allocation2 + $0x60] sm:$0xf] %v142_v25 }
  0xa1   :  { %149 = vst [vmem:[#allocation2 + $0x90] sm:$0xf] %v143_v26 }
  0xa2   :  { %475 = vrot.lane.b32.xlu1 %v468_v10, %s1061_s6  ;;  %499 = vrot.lane.b32.xlu0 %v494_v27, %s1060_s5 }
  0xa3   :  { %497 = vrot.lane.b32.xlu2 %v493_v28, %s1060_s5 }
  0xa4   :  { %v170_v29 = vpop.permute.xlu1 %169 }
  0xa5   :  { %v227_v30 = vpop.permute.xlu2 %226 }
  0xa6   :  { %v168_v31 = vpop.permute.xlu0 %167 }
  0xa7   :  { %v173_v32 = vsel %vm171_vm4, %v166_v18, %v168_v31  ;;  %v174_v33 = vsel %vm171_vm4, %v168_v31, %v170_v29 }
  0xa8   :  { %179 = vst [vmem:[#allocation2 + $0x90] sm:$0xf0] %v173_v32 }
  0xa9   :  { %180 = vst [vmem:[#allocation2 + $0x20] sm:$0xf0] %v174_v33 }
  0xaa   :  { %389 = vrot.lane.b32.xlu1 %v1202_v58, %s1057_s24  ;;  %501 = vrot.lane.b32.xlu0 %v495_v34, %s1060_s5 }
  0xab   :  { %330 = vrot.lane.b32.xlu2 %v1179_v48, %s1055_s22 }
  0xac   :  { %v164_v35 = vpop.permute.xlu1 %163 }
  0xad   :  { %v172_v36 = vsel %vm171_vm4, %v164_v35, %v166_v18  ;;  %v229_v37 = vpop.permute.xlu2 %228 }
  0xae   :  { %178 = vst [vmem:[#allocation2 + $0x60] sm:$0xf0] %v172_v36  ;;  %v233_v38 = vsel %vm230_vm6, %v227_v30, %v229_v37  ;;  %v195_v39 = vpop.permute.xlu0 %194 }
  0xaf   :  { %239 = vst [vmem:[#allocation2 + $0x88] sm:$0xf0] %v233_v38  ;;  %v201_v41 = vsel %vm200_vm5, %v193_v22, %v195_v39  ;;  %v529_v13 = vld [vmem:[#allocation2 + $0x90] sm:$0xff] }
  0xb0   :  { %207 = vst [vmem:[#allocation2 + $0x28] sm:$0xf] %v201_v41  ;;  %v530_v63 = vld [vmem:[#allocation2 + $0x20] sm:$0xff] }
  0xb2   :  { %503 = vrot.lane.b32.xlu0 %v496_v40, %s1060_s5  ;;  %332 = vrot.lane.b32.xlu1 %v1181_v49, %s1055_s22 }
  0xb3   :  { %418 = vrot.lane.b32.xlu2 %v1209_v62, %s1058_s25 }
  0xb4   :  { %v197_v42 = vpop.permute.xlu1 %196 }
  0xb5   :  { %v202_v43 = vsel %vm200_vm5, %v195_v39, %v197_v42  ;;  %v225_v46 = vpop.permute.xlu2 %224  ;;  %v528_v14 = vld [vmem:[#allocation2 + $0x60] sm:$0xff] }
  0xb6   :  { %208 = vst [vmem:[#allocation2 + $0xe8] sm:$0xf] %v202_v43  ;;  %v232_v47 = vsel %vm230_vm6, %v225_v46, %v227_v30 }
  0xb7   :  { %238 = vst [vmem:[#allocation2 + $0xe8] sm:$0xf0] %v232_v47 }
  0xba   :  { %359 = vrot.lane.b32.xlu0 %v1191_v52, %s1056_s23 }
  0xbb   :  { %361 = vrot.lane.b32.xlu2 %v1193_v53, %s1056_s23 }
  0xbc   :  { %v199_v48 = vpop.permute.xlu1 %198  ;;  %v256_v50 = vpop.permute.xlu0 %255 }
  0xbd   :  { %v203_v49 = vsel %vm200_vm5, %v197_v42, %v199_v48  ;;  %v105_v51 = vpop.permute.xlu2 %104 }
  0xbe   :  { %209 = vst [vmem:[#allocation2 + $0x88] sm:$0xf] %v203_v49  ;;  %v535_v12 = vld [vmem:[#allocation2 + $0xe8] sm:$0xff] }
  0xc2   :  { %302 = vrot.lane.b32.xlu0 %v1170_v44, %s1054_s21 }
  0xc4   :  { %v258_v54 = vpop.permute.xlu0 %257  ;;  %v223_v55 = vpop.permute.xlu1 %222 }
  0xc5   :  { %v262_v56 = vsel %vm259_vm7, %v256_v50, %v258_v54  ;;  %v46_v57 = vpop.permute.xlu2 %45  ;;  %v231_v52 = vsel %vm230_vm6, %v223_v55, %v225_v46  ;;  %v536_v62 = vld [vmem:[#allocation2 + $0x88] sm:$0xff] }
  0xc6   :  { %268 = vst [vmem:[#allocation2 + $0xd0] sm:$0xf] %v262_v56 }
  0xc7   :  { %237 = vst [vmem:[#allocation2 + $0x28] sm:$0xf0] %v231_v52 }
  0xca   :  { %304 = vrot.lane.b32.xlu0 %v1172_v45, %s1054_s21 }
  0xcc   :  { %v254_v53 = vpop.permute.xlu1 %253  ;;  %v252_v58 = vpop.permute.xlu0 %251 }
  0xcd   :  { %v261_v59 = vsel %vm259_vm7, %v254_v53, %v256_v50  ;;  %v260_v44 = vsel %vm259_vm7, %v252_v58, %v254_v53  ;;  %v1282_v60 = vpop.permute.xlu2 %300  ;;  %v542_v61 = vld [vmem:[#allocation2 + $0xd0] sm:$0xf]  ;;  %v1322_v53 = vld [vmem:[%s1578_s1] sm:$0xff] }
  0xce   :  { %267 = vst [vmem:[#allocation2 + $0x78] sm:$0xf] %v261_v59  ;;  %1005 = vmatpush.msk.msra.mxu2 %vm553_vm8, %v542_v61 }
  0xcf   :  { %266 = vst [vmem:[#allocation2 + $0xc0] sm:$0xf] %v260_v44 }
  0xd0   :  { %630 = vmatpush.msra.mxu2 %v536_v62  ;;  %v1335_v62 = vld [vmem:[%s1578_s1 + $0x8] sm:$0xff] }
  0xd2   :  { %631 = vmatpush.msra.mxu2 %v530_v63 }
  0xd4   :  { %632 = vmatpush.msra.mxu2 %v524_v0  ;;  %v77_v45 = vpop.permute.xlu1 %76  ;;  %v107_v1 = vpop.permute.xlu0 %106 }
  0xd5   :  { %v83_v2 = vsel %vm82_vm1, %v1234_v16, %v77_v45  ;;  %v84_v3 = vsel %vm82_vm1, %v77_v45, %v1229_v11  ;;  %v113_v5 = vsel %vm112_vm2, %v105_v51, %v107_v1  ;;  %v1290_v6 = vpop.permute.xlu2 %328  ;;  %v541_v7 = vld [vmem:[#allocation2 + $0x78] sm:$0xf]  ;;  %v114_v9 = vsel %vm112_vm2, %v107_v1, %v1239_v19  ;;  %v534_v11 = vld [vmem:[#allocation2 + $0x28] sm:$0xff] }
  0xd6   :  { %89 = vst [vmem:[#allocation2 + $0x30] sm:$0xf] %v83_v2  ;;  %v540_v10 = vld [vmem:[#allocation2 + $0xc0] sm:$0xf]  ;;  %1002 = vmatpush.msk.msra.mxu1 %vm553_vm8, %v541_v7  ;;  %633 = vmatpush.msra.mxu2 %v518_v8 }
  0xd7   :  { %90 = vst [vmem:[#allocation2 + $0x98] sm:$0xf] %v84_v3  ;;  %999 = vmatpush.msk.msra.mxu0 %vm553_vm8, %v540_v10  ;;  %1006 = vmatmul.msk.f32.vlgmr.msra.gmra.mxu2 %vm546_vm9, %v1322_v53 }
  0xd8   :  { %119 = vst [vmem:[#allocation2 + $0x30] sm:$0xf0] %v113_v5  ;;  %607 = vmatpush.msra.mxu1 %v535_v12 }
  0xd9   :  { %120 = vst [vmem:[#allocation2 + $0x98] sm:$0xf0] %v114_v9  ;;  %584 = vmatpush.msra.mxu0 %v534_v11 }
  0xda   :  { %608 = vmatpush.msra.mxu1 %v529_v13 }
  0xdb   :  { %585 = vmatpush.msra.mxu0 %v528_v14 }
  0xdc   :  { %v48_v15 = vpop.permute.xlu0 %47  ;;  %v299_v16 = vpop.permute.xlu1 %298 }
  0xdd   :  { %v54_v17 = vsel %vm53_vm0, %v46_v57, %v48_v15  ;;  %v55_v18 = vsel %vm53_vm0, %v48_v15, %v1220_v4  ;;  %v306_v19 = vsel %vm53_vm0, %v299_v16, %v1282_v60  ;;  %v413_v20 = vpop.permute.xlu2 %412 }
  0xde   :  { %60 = vst [vmem:[#allocation2 + $0x80] sm:$0xf0] %v54_v17 }
  0xdf   :  { %61 = vst [vmem:[#allocation2] sm:$0xf0] %v55_v18  ;;  %v522_v21 = vld [vmem:[#allocation2 + $0x30] sm:$0xff]  ;;  %1007 = vmatmul.msk.f32.gmra.mxu2 %vm546_vm9, %v1335_v62 }
  0xe0   :  { %312 = vst [vmem:[#allocation2 + $0x70] sm:$0xf0] %v306_v19  ;;  %586 = vmatpush.msra.mxu0 %v522_v21  ;;  %v523_v22 = vld [vmem:[#allocation2 + $0x98] sm:$0xff] }
  0xe1   :  { %609 = vmatpush.msra.mxu1 %v523_v22 }
  0xe4   :  { %v327_v23 = vpop.permute.xlu1 %326  ;;  %v356_v24 = vpop.permute.xlu0 %355 }
  0xe5   :  { %v334_v25 = vsel %vm82_vm1, %v327_v23, %v1290_v6  ;;  %v417_v26 = vpop.permute.xlu2 %416  ;;  %v516_v27 = vld [vmem:[#allocation2 + $0x80] sm:$0xff] }
  0xe6   :  { %340 = vst [vmem:[#allocation2 + $0xa8] sm:$0xf] %v334_v25  ;;  %587 = vmatpush.msra.mxu0 %v516_v27  ;;  %v517_v4 = vld [vmem:[#allocation2] sm:$0xff] }
  0xe7   :  { %610 = vmatpush.msra.mxu1 %v517_v4  ;;  %1000 = vmatmul.msk.f32.vlgmr.msra.gmra.mxu0 %vm546_vm9, %v1322_v53  ;;  %v519_v12 = vld [vmem:[#allocation2 + $0x70] sm:$0xff] }
  0xe8   :  { %1003 = vmatmul.msk.f32.vlgmr.msra.gmra.mxu1 %vm546_vm9, %v1322_v53 }
  0xec   :  { %v1303_v28 = vpop.permute.xlu1 %357  ;;  %v384_v29 = vpop.permute.xlu0 %383 }
  0xed   :  { %v363_v30 = vsel %vm112_vm2, %v356_v24, %v1303_v28  ;;  %v470_v31 = vpop.permute.xlu2 %469 }
  0xee   :  { %369 = vst [vmem:[#allocation2 + $0xa8] sm:$0xf0] %v363_v30 }
  0xef   :  { %1001 = vmatmul.msk.f32.gmra.mxu0 %vm546_vm9, %v1335_v62 }
  0xf0   :  { %1004 = vmatmul.msk.f32.gmra.mxu1 %vm546_vm9, %v1335_v62 }
  0xf4   :  { %v386_v32 = vpop.permute.xlu1 %385  ;;  %v415_v33 = vpop.permute.xlu0 %414 }
  0xf5   :  { %v391_v34 = vsel %vm141_vm3, %v384_v29, %v386_v32  ;;  %v420_v35 = vsel %vm171_vm4, %v413_v20, %v415_v33  ;;  %v421_v36 = vsel %vm171_vm4, %v415_v33, %v417_v26  ;;  %v474_v37 = vpop.permute.xlu2 %473  ;;  %v525_v7 = vld [vmem:[#allocation2 + $0xa8] sm:$0xff]  ;;  %v710_v29 = vld [vmem:[%s1579_s3] sm:$0x3f] }
  0xf6   :  { %397 = vst [vmem:[#allocation2 + $0x40] sm:$0xf] %v391_v34  ;;  %v713_v33 = vperm.slane %v710_v29, 1 }
  0xf7   :  { %426 = vst [vmem:[#allocation2 + $0x40] sm:$0xf0] %v420_v35 }
  0xf8   :  { %427 = vst [vmem:[#allocation2 + $0x48] sm:$0xf0] %v421_v36 }
  0xfc   :  { %v443_v38 = vpop.permute.xlu1 %442  ;;  %v441_v39 = vpop.permute.xlu0 %440 }
  0xfd   :  { %v448_v40 = vsel %vm200_vm5, %v441_v39, %v443_v38  ;;  %v498_v41 = vpop.permute.xlu2 %497 }
  0xfe   :  { %454 = vst [vmem:[#allocation2 + $0xa0] sm:$0xf] %v448_v40  ;;  %v531_v5 = vld [vmem:[#allocation2 + $0x40] sm:$0xff] }
 0x104   :  { %v445_v42 = vpop.permute.xlu1 %444  ;;  %v447_v43 = vpop.permute.xlu0 %446 }
 0x105   :  { %v449_v46 = vsel %vm200_vm5, %v443_v38, %v445_v42  ;;  %v450_v47 = vsel %vm200_vm5, %v445_v42, %v447_v43  ;;  %v331_v48 = vpop.permute.xlu2 %330  ;;  %v715_v42 = vperm.slane %v710_v29, 3 }
 0x106   :  { %455 = vst [vmem:[#allocation2 + $0xb8] sm:$0xf] %v449_v46  ;;  %v335_v50 = vsel %vm82_vm1, %v1290_v6, %v331_v48 }
 0x107   :  { %456 = vst [vmem:[#allocation2 + $0x50] sm:$0xf] %v450_v47 }
 0x108   :  { %341 = vst [vmem:[#allocation2 + $0x10] sm:$0xf] %v335_v50 }
 0x10c   :  { %v388_v49 = vpop.permute.xlu1 %387  ;;  %v472_v51 = vpop.permute.xlu0 %471 }
 0x10d   :  { %v392_v54 = vsel %vm141_vm3, %v386_v32, %v388_v49  ;;  %v477_v55 = vsel %vm230_vm6, %v470_v31, %v472_v51  ;;  %v478_v56 = vsel %vm230_vm6, %v472_v51, %v474_v37  ;;  %v419_v57 = vpop.permute.xlu2 %418  ;;  %v712_v32 = vperm.slane %v710_v29, 0 }
 0x10e   :  { %398 = vst [vmem:[#allocation2 + $0x48] sm:$0xf] %v392_v54  ;;  %v422_v52 = vsel %vm171_vm4, %v417_v26, %v419_v57 }
 0x10f   :  { %483 = vst [vmem:[#allocation2 + $0xa0] sm:$0xf0] %v477_v55 }
 0x110   :  { %484 = vst [vmem:[#allocation2 + $0xb8] sm:$0xf0] %v478_v56 }
 0x111   :  { %428 = vst [vmem:[#allocation2 + $0x58] sm:$0xf0] %v422_v52 }
 0x114   :  { %v476_v58 = vpop.permute.xlu1 %475  ;;  %v500_v59 = vpop.permute.xlu0 %499 }
 0x115   :  { %v479_v44 = vsel %vm230_vm6, %v474_v37, %v476_v58  ;;  %v505_v61 = vsel %vm259_vm7, %v498_v41, %v500_v59  ;;  %v532_v14 = vld [vmem:[#allocation2 + $0x48] sm:$0xff]  ;;  %v362_v15 = vpop.permute.xlu2 %361  ;;  %v714_v37 = vperm.slane %v710_v29, 2 }
 0x116   :  { %485 = vst [vmem:[#allocation2 + $0x50] sm:$0xf0] %v479_v44  ;;  %v537_v3 = vld [vmem:[#allocation2 + $0xa0] sm:$0xff] }
 0x117   :  { %511 = vst [vmem:[#allocation2 + $0xb0] sm:$0xf] %v505_v61  ;;  %v538_v13 = vld [vmem:[#allocation2 + $0xb8] sm:$0xff] }
 0x11c   :  { %v390_v63 = vpop.permute.xlu1 %389  ;;  %v502_v0 = vpop.permute.xlu0 %501 }
 0x11d   :  { %v393_v45 = vsel %vm141_vm3, %v388_v49, %v390_v63  ;;  %v506_v1 = vsel %vm259_vm7, %v500_v59, %v502_v0  ;;  %v539_v20 = vld [vmem:[#allocation2 + $0x50] sm:$0xff] }
 0x11e   :  { %399 = vst [vmem:[#allocation2 + $0x58] sm:$0xf] %v393_v45  ;;  %v543_v2 = vld [vmem:[#allocation2 + $0xb0] sm:$0xf] }
 0x11f   :  { %512 = vst [vmem:[#allocation2 + $0xe0] sm:$0xf] %v506_v1  ;;  %1008 = vmatpush.msk.msra.mxu3 %vm553_vm8, %v543_v2 }
 0x121   :  { %653 = vmatpush.msra.mxu3 %v537_v3 }
 0x123   :  { %654 = vmatpush.msra.mxu3 %v531_v5 }
 0x124   :  { %v504_v6 = vpop.permute.xlu0 %503  ;;  %v333_v8 = vpop.permute.xlu1 %332 }
 0x125   :  { %v507_v9 = vsel %vm259_vm7, %v502_v0, %v504_v6  ;;  %655 = vmatpush.msra.mxu3 %v525_v7  ;;  %v336_v10 = vsel %vm82_vm1, %v331_v48, %v333_v8  ;;  %v533_v21 = vld [vmem:[#allocation2 + $0x58] sm:$0xff]  ;;  %v716_v48 = vperm.slane %v710_v29, 4 }
 0x126   :  { %513 = vst [vmem:[#allocation2 + $0x38] sm:$0xf] %v507_v9  ;;  %v544_v11 = vld [vmem:[#allocation2 + $0xe0] sm:$0xf] }
 0x127   :  { %656 = vmatpush.msra.mxu3 %v519_v12  ;;  %1011 = vmatpush.msk.msrb.mxu0 %vm553_vm8, %v544_v11  ;;  %342 = vst [vmem:[#allocation2 + $0x68] sm:$0xf] %v336_v10 }
 0x128   :  { %1029 = vmatpush.msk.msrb.mxu2 %vm553_vm8, %v544_v11  ;;  %1009 = vmatmul.msk.f32.vlgmr.msra.gmra.mxu3 %vm546_vm9, %v1322_v53 }
 0x129   :  { %676 = vmatpush.msrb.mxu0 %v538_v13 }
 0x12a   :  { %1030 = vmatpush.msrb.mxu2 %v538_v13 }
 0x12b   :  { %677 = vmatpush.msrb.mxu0 %v532_v14 }
 0x12c   :  { %1031 = vmatpush.msrb.mxu2 %v532_v14  ;;  %v360_v16 = vpop.permute.xlu0 %359 }
 0x12d   :  { %v364_v17 = vsel %vm112_vm2, %v1303_v28, %v360_v16  ;;  %v365_v18 = vsel %vm112_vm2, %v360_v16, %v362_v15  ;;  %v545_v19 = vld [vmem:[#allocation2 + $0x38] sm:$0xf] }
 0x12e   :  { %370 = vst [vmem:[#allocation2 + $0x10] sm:$0xf0] %v364_v17  ;;  %1014 = vmatpush.msk.msrb.mxu1 %vm553_vm8, %v545_v19  ;;  %1034 = vmatpush.msk.msrb.mxu3 %vm553_vm8, %v545_v19 }
 0x12f   :  { %371 = vst [vmem:[#allocation2 + $0x68] sm:$0xf0] %v365_v18 }
 0x130   :  { %699 = vmatpush.msrb.mxu1 %v539_v20  ;;  %1035 = vmatpush.msrb.mxu3 %v539_v20 }
 0x131   :  { %1010 = vmatmul.msk.f32.gmra.mxu3 %vm546_vm9, %v1335_v62 }
 0x132   :  { %700 = vmatpush.msrb.mxu1 %v533_v21  ;;  %1036 = vmatpush.msrb.mxu3 %v533_v21 }
 0x134   :  { %v303_v22 = vpop.permute.xlu0 %302 }
 0x135   :  { %v307_v23 = vsel %vm53_vm0, %v1282_v60, %v303_v22  ;;  %v526_v24 = vld [vmem:[#allocation2 + $0x10] sm:$0xff] }
 0x136   :  { %313 = vst [vmem:[#allocation2 + $0x8] sm:$0xf0] %v307_v23  ;;  %678 = vmatpush.msrb.mxu0 %v526_v24  ;;  %1032 = vmatpush.msrb.mxu2 %v526_v24  ;;  %v527_v25 = vld [vmem:[#allocation2 + $0x68] sm:$0xff] }
 0x137   :  { %701 = vmatpush.msrb.mxu1 %v527_v25  ;;  %1037 = vmatpush.msrb.mxu3 %v527_v25 }
 0x13c   :  { %v305_v26 = vpop.permute.xlu0 %304 }
 0x13d   :  { %v308_v27 = vsel %vm53_vm0, %v303_v22, %v305_v26  ;;  %v520_v4 = vld [vmem:[#allocation2 + $0x8] sm:$0xff] }
 0x13e   :  { %314 = vst [vmem:[#allocation2 + $0x18] sm:$0xf0] %v308_v27  ;;  %679 = vmatpush.msrb.mxu0 %v520_v4  ;;  %1033 = vmatpush.msrb.mxu2 %v520_v4 }
 0x13f   :  { %1012 = vmatmul.msk.f32.vlgmr.msrb.gmra.mxu0 %vm546_vm9, %v1322_v53  ;;  %1013 = vmatmul.msk.f32.vlgmr.msrb.gmra.mxu2 %vm546_vm9, %v1335_v62 }
 0x145   :  { %v521_v60 = vld [vmem:[#allocation2 + $0x18] sm:$0xff] }
 0x146   :  { %702 = vmatpush.msrb.mxu1 %v521_v60  ;;  %1038 = vmatpush.msrb.mxu3 %v521_v60  ;;  %v1062_v60 = vmov 0  }
 0x147   :  { %1015 = vmatmul.msk.f32.vlgmr.msrb.gmra.mxu1 %vm546_vm9, %v1322_v53  ;;  %1016 = vmatmul.msk.f32.vlgmr.msrb.gmra.mxu3 %vm546_vm9, %v1335_v62  ;;  %v717_v62 = vperm.slane %v710_v29, 5 }
 0x148   :  { %1050 = vset.pattern.permute.xlu2 %v1062_v60 }
 0x15a   :  { %v1377_v31 = vpop.f32.mrf.mxu2 }
 0x15b   :  { %v726_v41 = vmul.f32 %v714_v37, %v1377_v31 }
 0x15d   :  { %v752_v55 = vmul.f32 %v726_v41, %v1377_v31 }
 0x162   :  { %v1390_v46 = vpop.f32.mrf.mxu2 }
 0x163   :  { %v732_v44 = vmul.f32 %v714_v37, %v1390_v46 }
 0x164   :  { %v1370_v28 = vpop.f32.mrf.mxu0 }
 0x165   :  { %v1375_v30 = vpop.f32.mrf.mxu1  ;;  %v724_v35 = vmul.f32 %v712_v32, %v1370_v28  ;;  %v758_v3 = vmul.f32 %v732_v44, %v1390_v46 }
 0x166   :  { %v725_v36 = vmul.f32 %v713_v33, %v1375_v30 }
 0x167   :  { %v750_v39 = vmul.f32 %v724_v35, %v1370_v28 }
 0x168   :  { %v751_v40 = vmul.f32 %v725_v36, %v1375_v30  ;;  %v736_v47 = vadd.f32 %v725_v36, %v724_v35 }
 0x16a   :  { %v762_v54 = vadd.f32 %v751_v40, %v750_v39  ;;  %v737_v52 = vadd.f32 %v736_v47, %v726_v41 }
 0x16c   :  { %v1379_v34 = vpop.f32.mrf.mxu0  ;;  %v763_v63 = vadd.f32 %v762_v54, %v752_v55 }
 0x16d   :  { %v1388_v43 = vpop.f32.mrf.mxu1  ;;  %v730_v50 = vmul.f32 %v712_v32, %v1379_v34 }
 0x16e   :  { %v731_v49 = vmul.f32 %v713_v33, %v1388_v43 }
 0x16f   :  { %v756_v53 = vmul.f32 %v730_v50, %v1379_v34 }
 0x170   :  { %v743_v58 = vadd.f32 %v731_v49, %v730_v50  ;;  %v757_v59 = vmul.f32 %v731_v49, %v1388_v43 }
 0x172   :  { %v769_v2 = vadd.f32 %v757_v59, %v756_v53  ;;  %v744_v7 = vadd.f32 %v743_v58, %v732_v44 }
 0x174   :  { %v770_v19 = vadd.f32 %v769_v2, %v758_v3 }
 0x1ab   :  { %v1383_v38 = vpop.f32.mrf.mxu3 }
 0x1ac   :  { %v727_v56 = vmul.f32 %v715_v42, %v1383_v38 }
 0x1ae   :  { %v753_v61 = vmul.f32 %v727_v56, %v1383_v38  ;;  %v738_v1 = vadd.f32 %v737_v52, %v727_v56 }
 0x1b0   :  { %v764_v12 = vadd.f32 %v763_v63, %v753_v61 }
 0x1b4   :  { %v1403_v0 = vpop.f32.mrf.mxu3 }
 0x1b5   :  { %v733_v8 = vmul.f32 %v715_v42, %v1403_v0 }
 0x1b7   :  { %v759_v16 = vmul.f32 %v733_v8, %v1403_v0  ;;  %v745_v18 = vadd.f32 %v744_v7, %v733_v8  ;;  %v1064_v7 = vmov 1  }
 0x1b8   :  { %1051 = vset.pattern.permute.xlu0 %v1064_v7 }
 0x1b9   :  { %v771_v26 = vadd.f32 %v770_v19, %v759_v16 }
 0x1bc   :  { %v1394_v51 = vpop.f32.mrf.mxu0 }
 0x1bd   :  { %v728_v57 = vmul.f32 %v716_v48, %v1394_v51 }
 0x1bf   :  { %v754_v45 = vmul.f32 %v728_v57, %v1394_v51  ;;  %v739_v10 = vadd.f32 %v738_v1, %v728_v57 }
 0x1c1   :  { %v765_v15 = vadd.f32 %v764_v12, %v754_v45  ;;  %v810_v45 = vld [vmem:[%s1580_s2] sm:$0xf] }
 0x1c2   :  { %v1407_v5 = vpop.f32.mrf.mxu2 }
 0x1c3   :  { %v734_v11 = vmul.f32 %v716_v48, %v1407_v5 }
 0x1c4   :  { %v1409_v6 = vpop.f32.mrf.mxu1 }
 0x1c5   :  { %v729_v9 = vmul.f32 %v717_v62, %v1409_v6  ;;  %v760_v21 = vmul.f32 %v734_v11, %v1407_v5  ;;  %v746_v23 = vadd.f32 %v745_v18, %v734_v11 }
 0x1c7   :  { %v740_v13 = vadd.f32 %v739_v10, %v729_v9  ;;  %v755_v14 = vmul.f32 %v729_v9, %v1409_v6  ;;  %v772_v27 = vadd.f32 %v771_v26, %v760_v21 }
 0x1c9   :  { %741 = vadd.xlane.f32.xlu1 %v740_v13  ;;  %v766_v17 = vadd.f32 %v765_v15, %v755_v14 }
 0x1ca   :  { %v1416_v20 = vpop.f32.mrf.mxu3 }
 0x1cb   :  { %767 = vadd.xlane.f32.xlu2 %v766_v17  ;;  %v735_v22 = vmul.f32 %v717_v62, %v1416_v20 }
 0x1cd   :  { %v747_v24 = vadd.f32 %v746_v23, %v735_v22  ;;  %v761_v25 = vmul.f32 %v735_v22, %v1416_v20 }
 0x1cf   :  { %748 = vadd.xlane.f32.xlu0 %v747_v24  ;;  %v773_v4 = vadd.f32 %v772_v27, %v761_v25 }
 0x1d3   :  { %774 = vadd.xlane.f32.xlu2 %v773_v4 }
 0x23c   :  { %v742_v29 = vpop.xlane.xlu1 %741 }
 0x23d   :  { %v777_v32 = vrot.slane %v742_v29, 4 }
 0x23e   :  { %v768_v33 = vpop.xlane.xlu2 %767 }
 0x23f   :  { %v779_v35 = vadd.f32 %v777_v32, %v742_v29  ;;  %v781_v36 = vrot.slane %v768_v33, 4 }
 0x241   :  { %v783_v41 = vadd.f32 %v781_v36, %v768_v33 }
 0x242   :  { %v749_v37 = vpop.xlane.xlu0 %748 }
 0x243   :  { %v784_v39 = vadd.f32 %v779_v35, %v749_v37  ;;  %v787_v40 = vrot.slane %v749_v37, 4 }
 0x245   :  { %v789_v42 = vadd.f32 %v787_v40, %v784_v39 }
 0x246   :  { %v775_v47 = vpop.xlane.xlu2 %774 }
 0x247   :  { %v794_v48 = vmul.f32 0.00048828125, %v789_v42  ;;  %v785_v50 = vadd.f32 %v783_v41, %v775_v47  ;;  %v791_v49 = vrot.slane %v775_v47, 4 }
 0x249   :  { %v793_v54 = vadd.f32 %v791_v49, %v785_v50  ;;  %v796_v55 = vmul.f32 %v794_v48, %v794_v48 }
 0x24b   :  { %v795_v56 = vmul.f32 0.00048828125, %v793_v54 }
 0x24d   :  { %v797_v57 = vsub.f32 %v795_v56, %v796_v55 }
 0x24f   :  { %v798_v52 = vmax.f32 %v797_v57, 0.0 }
 0x251   :  { %v799_v53 = vadd.f32 1e-05, %v798_v52 }
 0x253   :  { %1052 = vrsqrt.f32 %v799_v53  ;;  %vm806_vm11 = vweird.f32 %v799_v53 }
 0x259   :  { %v1053_v58 = vpop.eup %1052 }
 0x25a   :  { %v801_v59 = vmul.f32 %v1053_v58, %v799_v53  ;;  %vm807_vm10 = vweird.f32 %v1053_v58 }
 0x25b   :  { %vm808_vm12 = vmor %vm806_vm11, %vm807_vm10 }
 0x25c   :  { %v802_v44 = vmul.f32 %v1053_v58, %v801_v59 }
 0x25e   :  { %v803_v61 = vmul.f32 0.5, %v802_v44 }
 0x260   :  { %v804_v62 = vsub.f32 1.5, %v803_v61 }
 0x262   :  { %v805_v63 = vmul.f32 %v1053_v58, %v804_v62 }
 0x264   :  { %v809_v1 = vsel %vm808_vm12, %v1053_v58, %v805_v63 }
 0x265   :  { %v811_v2 = vmul.f32 %v810_v45, %v809_v1 }
 0x267   :  { %820 = vperm.xlu2 %1050, %v811_v2   ;;  %v812_v3 = vmul.f32 %v811_v2, %v794_v48 }
 0x269   :  { %814 = vrot.lane.b32.xlu1 %v812_v3, %s1063_s14 }
 0x2c1   :  { %v821_v10 = vpop.permute.xlu2 %820 }
 0x2c2   :  { %v865_v12 = vrot.slane %v821_v10, 4  ;;  %v823_v11 = vmul.f32 %v821_v10, %v1370_v28  ;;  %v824_v13 = vmul.f32 %v821_v10, %v1375_v30  ;;  %v825_v14 = vmul.f32 %v821_v10, %v1377_v31 }
 0x2c3   :  { %v826_v15 = vmul.f32 %v821_v10, %v1383_v38  ;;  %v827_v16 = vmul.f32 %v821_v10, %v1394_v51  ;;  %v828_v17 = vmul.f32 %v821_v10, %v1409_v6  ;;  %v905_v18 = vmul.f32 %v821_v10, %v1379_v34 }
 0x2c4   :  { %v906_v19 = vmul.f32 %v821_v10, %v1388_v43  ;;  %v1433_v21 = vmul.f32 %v821_v10, %v1390_v46  ;;  %v1436_v22 = vmul.f32 %v821_v10, %v1403_v0  ;;  %v1439_v23 = vmul.f32 %v821_v10, %v1407_v5 }
 0x2c5   :  { %v867_v24 = vmul.f32 %v865_v12, %v1370_v28  ;;  %v868_v25 = vmul.f32 %v865_v12, %v1375_v30  ;;  %v869_v26 = vmul.f32 %v865_v12, %v1377_v31  ;;  %v870_v27 = vmul.f32 %v865_v12, %v1383_v38 }
 0x2c6   :  { %v871_v4 = vmul.f32 %v865_v12, %v1394_v51  ;;  %v872_v60 = vmul.f32 %v865_v12, %v1409_v6  ;;  %v910_v29 = vmul.f32 %v821_v10, %v1416_v20  ;;  %v1449_v32 = vmul.f32 %v865_v12, %v1379_v34 }
 0x2c7   :  { %v1452_v33 = vmul.f32 %v865_v12, %v1388_v43  ;;  %v1455_v28 = vmul.f32 %v865_v12, %v1390_v46  ;;  %v1458_v30 = vmul.f32 %v865_v12, %v1403_v0  ;;  %v1461_v31 = vmul.f32 %v865_v12, %v1407_v5 }
 0x2c8   :  { %v1464_v34 = vmul.f32 %v865_v12, %v1416_v20 }
 0x2db   :  { %v815_v8 = vpop.permute.xlu1 %814 }
 0x2dc   :  { %v817_v9 = vsub.f32 %v810_v45, %v815_v8 }
 0x2de   :  { %831 = vperm.xlu0 %1051, %v817_v9  }
 0x350   :  { %v832_v38 = vpop.permute.xlu0 %831 }
 0x351   :  { %v834_v51 = vadd.f32 %v832_v38, %v823_v11  ;;  %v835_v6 = vadd.f32 %v832_v38, %v824_v13  ;;  %v836_v35 = vadd.f32 %v832_v38, %v825_v14  ;;  %v837_v36 = vadd.f32 %v832_v38, %v826_v15 }
 0x352   :  { %v838_v37 = vadd.f32 %v832_v38, %v827_v16  ;;  %v839_v43 = vadd.f32 %v832_v38, %v828_v17  ;;  %v1466_v39 = vrot.slane %v832_v38, 4  ;;  %v911_v56 = vadd.f32 %v905_v18, %v832_v38 }
 0x353   :  { %vm840_vm13 = vcmp.ge.f32.partialorder %v834_v51, 0.0  ;;  %vm841_vm14 = vcmp.ge.f32.partialorder %v835_v6, 0.0  ;;  %vm842_vm15 = vcmp.ge.f32.partialorder %v836_v35, 0.0  ;;  %vm843_vm0 = vcmp.ge.f32.partialorder %v837_v36, 0.0 }
 0x354   :  { %vm844_vm1 = vcmp.ge.f32.partialorder %v838_v37, 0.0  ;;  %vm845_vm2 = vcmp.ge.f32.partialorder %v839_v43, 0.0  ;;  %v846_v46 = vmul.f32 0.05, %v834_v51  ;;  %v847_v0 = vmul.f32 0.05, %v835_v6 }
 0x355   :  { %v848_v5 = vmul.f32 0.05, %v836_v35  ;;  %v849_v40 = vmul.f32 0.05, %v837_v36  ;;  %v850_v41 = vmul.f32 0.05, %v838_v37  ;;  %v875_v42 = vadd.f32 %v1466_v39, %v867_v24 }
 0x356   :  { %v851_v47 = vmul.f32 0.05, %v839_v43  ;;  %v852_v20 = vsel %vm840_vm13, %v834_v51, %v846_v46  ;;  %v853_v48 = vsel %vm841_vm14, %v835_v6, %v847_v0  ;;  %v876_v50 = vadd.f32 %v1466_v39, %v868_v25 }
 0x357   :  { %v854_v49 = vsel %vm842_vm15, %v836_v35, %v848_v5  ;;  %v855_v54 = vsel %vm843_vm0, %v837_v36, %v849_v40  ;;  %858 = vst [vmem:[%s1581_s4] sm:$0xf] %v852_v20  ;;  %v877_v55 = vadd.f32 %v1466_v39, %v869_v26  ;;  %v856_v57 = vsel %vm844_vm1, %v838_v37, %v850_v41 }
 0x358   :  { %859 = vst [vmem:[%s1581_s4 + $0x8] sm:$0xf] %v853_v48  ;;  %v878_v52 = vadd.f32 %v1466_v39, %v870_v27  ;;  %v879_v53 = vadd.f32 %v1466_v39, %v871_v4  ;;  %v880_v58 = vadd.f32 %v1466_v39, %v872_v60  ;;  %v857_v59 = vsel %vm845_vm2, %v839_v43, %v851_v47 }
 0x359   :  { %860 = vst [vmem:[%s1581_s4 + $0x10] sm:$0xf] %v854_v49  ;;  %vm881_vm3 = vcmp.ge.f32.partialorder %v875_v42, 0.0  ;;  %vm882_vm4 = vcmp.ge.f32.partialorder %v876_v50, 0.0  ;;  %vm883_vm5 = vcmp.ge.f32.partialorder %v877_v55, 0.0  ;;  %v912_v44 = vadd.f32 %v906_v19, %v832_v38 }
 0x35a   :  { %1017 = vst [vmem:[%s1581_s4 + $0x30] sm:$0xf] %v855_v54  ;;  %vm884_vm6 = vcmp.ge.f32.partialorder %v878_v52, 0.0  ;;  %vm885_vm7 = vcmp.ge.f32.partialorder %v879_v53, 0.0  ;;  %vm886_vm8 = vcmp.ge.f32.partialorder %v880_v58, 0.0  ;;  %v913_v63 = vadd.f32 %v1433_v21, %v832_v38 }
 0x35b   :  { %1018 = vst [vmem:[%s1581_s4 + $0x38] sm:$0xf] %v856_v57  ;;  %v887_v61 = vmul.f32 0.05, %v875_v42  ;;  %v888_v62 = vmul.f32 0.05, %v876_v50  ;;  %v914_v45 = vadd.f32 %v1436_v22, %v832_v38  ;;  %v915_v3 = vadd.f32 %v1439_v23, %v832_v38 }
 0x35c   :  { %1019 = vst [vmem:[%s1581_s4 + $0x40] sm:$0xf] %v857_v59  ;;  %v889_v1 = vmul.f32 0.05, %v877_v55  ;;  %v890_v2 = vmul.f32 0.05, %v878_v52  ;;  %v916_v7 = vadd.f32 %v910_v29, %v832_v38  ;;  %v947_v14 = vadd.f32 %v1449_v32, %v1466_v39 }
 0x35d   :  { %v891_v8 = vmul.f32 0.05, %v879_v53  ;;  %v892_v9 = vmul.f32 0.05, %v880_v58  ;;  %v893_v10 = vsel %vm881_vm3, %v875_v42, %v887_v61  ;;  %v894_v12 = vsel %vm882_vm4, %v876_v50, %v888_v62 }
 0x35e   :  { %v895_v11 = vsel %vm883_vm5, %v877_v55, %v889_v1  ;;  %v896_v13 = vsel %vm884_vm6, %v878_v52, %v890_v2  ;;  %899 = vst [vmem:[%s1581_s4] sm:$0xf0] %v893_v10  ;;  %vm917_vm9 = vcmp.ge.f32.partialorder %v911_v56, 0.0  ;;  %vm918_vm10 = vcmp.ge.f32.partialorder %v912_v44, 0.0 }
 0x35f   :  { %v897_v15 = vsel %vm885_vm7, %v879_v53, %v891_v8  ;;  %v898_v16 = vsel %vm886_vm8, %v880_v58, %v892_v9  ;;  %900 = vst [vmem:[%s1581_s4 + $0x8] sm:$0xf0] %v894_v12  ;;  %vm919_vm11 = vcmp.ge.f32.partialorder %v913_v63, 0.0  ;;  %vm920_vm12 = vcmp.ge.f32.partialorder %v914_v45, 0.0 }
 0x360   :  { %901 = vst [vmem:[%s1581_s4 + $0x10] sm:$0xf0] %v895_v11  ;;  %vm921_vm13 = vcmp.ge.f32.partialorder %v915_v3, 0.0  ;;  %v923_v17 = vmul.f32 0.05, %v911_v56  ;;  %v948_v18 = vadd.f32 %v1452_v33, %v1466_v39  ;;  %v949_v22 = vadd.f32 %v1455_v28, %v1466_v39 }
 0x361   :  { %1020 = vst [vmem:[%s1581_s4 + $0x30] sm:$0xf0] %v896_v13  ;;  %v924_v19 = vmul.f32 0.05, %v912_v44  ;;  %v925_v21 = vmul.f32 0.05, %v913_v63  ;;  %v950_v23 = vadd.f32 %v1458_v30, %v1466_v39  ;;  %v951_v27 = vadd.f32 %v1461_v31, %v1466_v39 }
 0x362   :  { %1021 = vst [vmem:[%s1581_s4 + $0x38] sm:$0xf0] %v897_v15  ;;  %v926_v24 = vmul.f32 0.05, %v914_v45  ;;  %v927_v25 = vmul.f32 0.05, %v915_v3  ;;  %v929_v26 = vsel %vm917_vm9, %v911_v56, %v923_v17  ;;  %v952_v33 = vadd.f32 %v1464_v34, %v1466_v39 }
 0x363   :  { %1022 = vst [vmem:[%s1581_s4 + $0x40] sm:$0xf0] %v898_v16  ;;  %vm922_vm14 = vcmp.ge.f32.partialorder %v916_v7, 0.0  ;;  %v928_v4 = vmul.f32 0.05, %v916_v7  ;;  %v930_v60 = vsel %vm918_vm10, %v912_v44, %v924_v19  ;;  %v931_v29 = vsel %vm919_vm11, %v913_v63, %v925_v21 }
 0x364   :  { %v932_v32 = vsel %vm920_vm12, %v914_v45, %v926_v24  ;;  %935 = vst [vmem:[%s1581_s4 + $0x18] sm:$0xf] %v929_v26  ;;  %v933_v28 = vsel %vm921_vm13, %v915_v3, %v927_v25  ;;  %vm953_vm15 = vcmp.ge.f32.partialorder %v947_v14, 0.0  ;;  %vm954_vm0 = vcmp.ge.f32.partialorder %v948_v18, 0.0 }
 0x365   :  { %936 = vst [vmem:[%s1581_s4 + $0x20] sm:$0xf] %v930_v60  ;;  %vm955_vm1 = vcmp.ge.f32.partialorder %v949_v22, 0.0  ;;  %v934_v30 = vsel %vm922_vm14, %v916_v7, %v928_v4  ;;  %vm956_vm2 = vcmp.ge.f32.partialorder %v950_v23, 0.0  ;;  %vm957_vm3 = vcmp.ge.f32.partialorder %v951_v27, 0.0 }
 0x366   :  { %937 = vst [vmem:[%s1581_s4 + $0x28] sm:$0xf] %v931_v29  ;;  %v959_v31 = vmul.f32 0.05, %v947_v14  ;;  %v960_v38 = vmul.f32 0.05, %v948_v18 }
 0x367   :  { %1023 = vst [vmem:[%s1581_s4 + $0x48] sm:$0xf] %v932_v32  ;;  %v961_v51 = vmul.f32 0.05, %v949_v22  ;;  %v962_v6 = vmul.f32 0.05, %v950_v23 }
 0x368   :  { %1024 = vst [vmem:[%s1581_s4 + $0x50] sm:$0xf] %v933_v28  ;;  %v963_v35 = vmul.f32 0.05, %v951_v27  ;;  %v965_v36 = vsel %vm953_vm15, %v947_v14, %v959_v31  ;;  %vm958_vm4 = vcmp.ge.f32.partialorder %v952_v33, 0.0  ;;  %v966_v37 = vsel %vm954_vm0, %v948_v18, %v960_v38 }
 0x369   :  { %1025 = vst [vmem:[%s1581_s4 + $0x58] sm:$0xf] %v934_v30  ;;  %v964_v34 = vmul.f32 0.05, %v952_v33  ;;  %v967_v43 = vsel %vm955_vm1, %v949_v22, %v961_v51  ;;  %v968_v39 = vsel %vm956_vm2, %v950_v23, %v962_v6 }
 0x36a   :  { %971 = vst [vmem:[%s1581_s4 + $0x18] sm:$0xf0] %v965_v36  ;;  %v969_v46 = vsel %vm957_vm3, %v951_v27, %v963_v35 }
 0x36b   :  { %972 = vst [vmem:[%s1581_s4 + $0x20] sm:$0xf0] %v966_v37  ;;  %v970_v0 = vsel %vm958_vm4, %v952_v33, %v964_v34 }
 0x36c   :  { %973 = vst [vmem:[%s1581_s4 + $0x28] sm:$0xf0] %v967_v43 }
 0x36d   :  { %1026 = vst [vmem:[%s1581_s4 + $0x48] sm:$0xf0] %v968_v39 }
 0x36e   :  { %1027 = vst [vmem:[%s1581_s4 + $0x50] sm:$0xf0] %v969_v46 }
 0x36f   :  { %1028 = vst [vmem:[%s1581_s4 + $0x58] sm:$0xf0] %v970_v0 }

</bundles_post_ra>
